<compile_context>
chip_gen: v6e
topology: v6e:2x2x1
jax: 0.10.0
libtpu: 0.0.40
codegen_flags: <defaults>
</compile_context>

<pallas_src>
import functools

import jax
import jax.numpy as jnp
from jax import lax
from jax.experimental import pallas as pl
from jax.experimental.pallas import tpu as pltpu


# ----------------------------- Pallas kernel ------------------------------- #

def _bottleneck_kernel(x_ref, w1_ref, b1_ref, w2_ref, b2_ref, w3_ref, b3_ref,
                       o_ref, *, H, W):
    # x_ref : (1, H*W, Cin)     bf16  channels-last, flattened spatial
    # w1_ref: (Cin, width)      bf16  conv1 1x1, BN1 scale folded in
    # b1_ref: (1, width)        f32   BN1 bias
    # w2_ref: (9*width, width)  bf16  conv2 3x3 taps (tap-major im2col layout),
    #                                 BN2 scale folded in
    # b2_ref: (1, width)        f32   BN2 bias
    # w3_ref: (width, Cout)     bf16  conv3 1x1, BN3 scale folded in
    # b3_ref: (1, Cout)         f32   BN3 bias
    # o_ref : (1, H*W, Cout)    bf16
    HW = H * W

    x = x_ref[0]                                              # (HW, Cin) bf16

    # ---- stage 1: 1x1 conv (+folded BN scale) + bias + ReLU ---------------- #
    h1 = jnp.dot(x, w1_ref[...], preferred_element_type=jnp.float32)
    h1 = jnp.maximum(h1 + b1_ref[...], 0.0)                   # (HW, width) f32

    # ---- stage 2: 3x3 conv as ONE im2col matmul (K = 9*width) -------------- #
    # Border masks from a flat-index iota: no padded buffer, no relayout slices.
    flat = lax.broadcasted_iota(jnp.int32, (HW, 1), 0)
    if (W & (W - 1)) == 0:                       # power-of-two W -> cheap bit mask
        col = jnp.bitwise_and(flat, W - 1)
    else:
        col = flat % W

    def tap_mask(dh, dw):
        m = None
        if dh == -1:
            m = flat >= W
        elif dh == 1:
            m = flat < HW - W
        if dw == -1:
            c = col >= 1
            m = c if m is None else jnp.logical_and(m, c)
        elif dw == 1:
            c = col <= W - 2
            m = c if m is None else jnp.logical_and(m, c)
        return m

    patches = []
    for dh in (-1, 0, 1):                        # tap order matches w2 reshape
        for dw in (-1, 0, 1):
            shift = (-(dh * W + dw)) % HW        # static -> XLU rotate
            p = pltpu.roll(h1, shift=shift, axis=0) if shift else h1
            m = tap_mask(dh, dw)
            if m is not None:
                p = jnp.where(m, p, 0.0)
            patches.append(p.astype(jnp.bfloat16))
    im2col = jnp.concatenate(patches, axis=1)                 # (HW, 9*width) bf16

    h2 = jnp.dot(im2col, w2_ref[...], preferred_element_type=jnp.float32)
    h2 = jnp.maximum(h2 + b2_ref[...], 0.0).astype(jnp.bfloat16)

    # ---- stage 3: 1x1 conv + bias + residual add + ReLU -------------------- #
    y = jnp.dot(h2, w3_ref[...], preferred_element_type=jnp.float32)
    # NOTE: the identity path was downcast to bf16 at the wrapper (HBM saving);
    # this costs a little precision on the skip connection vs. the f32 reference.
    y = y + b3_ref[...] + x.astype(jnp.float32)               # Cin == Cout identity
    o_ref[0] = jnp.maximum(y, 0.0).astype(o_ref.dtype)


# ------------------------------ Wrapper ------------------------------------ #

def _fold_bn(bn, eps=1e-5):
    gamma, beta, mean, var = bn
    scale = gamma / jnp.sqrt(var + eps)
    bias = beta - mean * scale
    return scale, bias


def _vmem_limit_bytes(H, W, Cin, width, Cout):
    HW = H * W
    blk_in = 2 * HW * Cin * 2                    # bf16 input block, double-buffered
    blk_out = 2 * HW * Cout * 2                  # bf16 output block, double-buffered
    wts = 2 * ((Cin * width + 9 * width * width + width * Cout) * 2
               + (2 * width + Cout) * 4)
    live = HW * (width * 4 + 9 * width * 2 + Cout * 4)   # h1(f32)+im2col(bf16)+y(f32)
    total = blk_in + blk_out + wts + live
    try:
        cap = int(pltpu.get_tpu_info().vmem_capacity_bytes)
    except Exception:                            # conservative fallback (v7x-sized)
        cap = 64 * 2 ** 20
    return int(min(max(2 * total, 16 * 2 ** 20), int(0.8 * cap)))


@jax.jit
def bottleneck_forward(x_nchw, params):
    """Bottleneck forward. NCHW input, NCHW bfloat16 output."""
    N, Cin, H, W = x_nchw.shape
    w1 = params["conv1_w"]                        # (Cin, width)
    w2 = params["conv2_w"]                        # (3, 3, width, width) HWIO
    w3 = params["conv3_w"]                        # (width, Cout)
    width = w1.shape[1]
    Cout = w3.shape[1]
    if Cin != Cout:
        # TODO(synk): projection (downsample) shortcut not implemented.
        raise NotImplementedError("identity shortcut requires inplanes == planes*4")

    s1, b1 = _fold_bn(params["bn1"])
    s2, b2 = _fold_bn(params["bn2"])
    s3, b3 = _fold_bn(params["bn3"])

    # Fold BN scales into the conv weights; bf16 MXU operands, f32 biases.
    w1f = (w1 * s1[None, :]).astype(jnp.bfloat16)
    w2f = (w2 * s2[None, None, None, :]).reshape(9 * width, width).astype(jnp.bfloat16)
    w3f = (w3 * s3[None, :]).astype(jnp.bfloat16)
    b1f = b1.reshape(1, width).astype(jnp.float32)
    b2f = b2.reshape(1, width).astype(jnp.float32)
    b3f = b3.reshape(1, Cout).astype(jnp.float32)

    # NCHW -> channels-last flattened spatial, bf16 (halves input HBM traffic).
    # TODO(synk): in a full network keep activations NHWC bf16 end-to-end and
    #             drop both wrapper transposes entirely.
    x_flat = (jnp.transpose(x_nchw, (0, 2, 3, 1))
              .reshape(N, H * W, Cin).astype(jnp.bfloat16))

    kernel = functools.partial(_bottleneck_kernel, H=H, W=W)
    out_flat = pl.pallas_call(
        kernel,
        out_shape=jax.ShapeDtypeStruct((N, H * W, Cout), jnp.bfloat16),
        grid=(N,),
        in_specs=[
            pl.BlockSpec((1, H * W, Cin), lambda n: (n, 0, 0)),
            pl.BlockSpec((Cin, width), lambda n: (0, 0)),
            pl.BlockSpec((1, width), lambda n: (0, 0)),
            pl.BlockSpec((9 * width, width), lambda n: (0, 0)),
            pl.BlockSpec((1, width), lambda n: (0, 0)),
            pl.BlockSpec((width, Cout), lambda n: (0, 0)),
            pl.BlockSpec((1, Cout), lambda n: (0, 0)),
        ],
        out_specs=pl.BlockSpec((1, H * W, Cout), lambda n: (n, 0, 0)),
        compiler_params=pltpu.CompilerParams(
            dimension_semantics=("parallel",),
            vmem_limit_bytes=_vmem_limit_bytes(H, W, Cin, width, Cout)),
    )(x_flat, w1f, b1f, w2f, b2f, w3f, b3f)

    out = out_flat.reshape(N, H, W, Cout)
    return jnp.transpose(out, (0, 3, 1, 2))       # bf16 NCHW (cheap transpose)


# ------------------------- Pure-JAX reference ------------------------------ #

def _ref_forward(x_nchw, params):
    def conv(x, w_oihw, pad):
        return jax.lax.conv_general_dilated(
            x, w_oihw, window_strides=(1, 1),
            padding=[(pad, pad), (pad, pad)],
            dimension_numbers=("NCHW", "OIHW", "NCHW"))

    def bn(x, g, b, m, v, eps=1e-5):
        sh = (1, -1, 1, 1)
        return (x - m.reshape(sh)) / jnp.sqrt(v.reshape(sh) + eps) \
            * g.reshape(sh) + b.reshape(sh)

    w1_oihw = params["conv1_w"].T[:, :, None, None]
    w2_oihw = jnp.transpose(params["conv2_w"], (3, 2, 0, 1))
    w3_oihw = params["conv3_w"].T[:, :, None, None]

    out = jax.nn.relu(bn(conv(x_nchw, w1_oihw, 0), *params["bn1"]))
    out = jax.nn.relu(bn(conv(out, w2_oihw, 1), *params["bn2"]))
    out = bn(conv(out, w3_oihw, 0), *params["bn3"])
    return jax.nn.relu(out + x_nchw)


# --------------------------------- main ------------------------------------ #

def _init_params(key, inplanes, planes, base_width=64, groups=1):
    width = int(planes * (base_width / 64.0)) * groups
    cout = planes * 4  # expansion = 4
    ks = jax.random.split(key, 6)

    def bn_params(k, c):
        kg, kb, km, kv = jax.random.split(k, 4)
        gamma = 0.5 + jax.random.uniform(kg, (c,), jnp.float32)
        beta = 0.1 * jax.random.normal(kb, (c,), jnp.float32)
        mean = 0.1 * jax.random.normal(km, (c,), jnp.float32)
        var = 0.5 + jax.random.uniform(kv, (c,), jnp.float32)
        return (gamma, beta, mean, var)

    return {
        # conv1: 1x1, (inplanes -> width), stored (Cin, Cout) for matmul
        "conv1_w": 0.1 * jax.random.normal(ks[0], (inplanes, width), jnp.float32),
        "bn1": bn_params(ks[1], width),
        # conv2: 3x3, (width -> width), stored HWIO
        "conv2_w": 0.1 * jax.random.normal(ks[2], (3, 3, width, width), jnp.float32),
        "bn2": bn_params(ks[3], width),
        # conv3: 1x1, (width -> planes*4)
        "conv3_w": 0.1 * jax.random.normal(ks[4], (width, cout), jnp.float32),
        "bn3": bn_params(ks[5], cout),
    }


if __name__ == "__main__":
    key = jax.random.PRNGKey(0)
    kx, kp = jax.random.split(key)

    # planes*expansion == inplanes -> identity add valid (downsample=None path)
    N, inplanes, planes, S = 2, 64, 16, 16
    x = jax.random.normal(kx, (N, inplanes, S, S), jnp.float32)   # NCHW input
    params = _init_params(kp, inplanes, planes)

    out = jax.block_until_ready(bottleneck_forward(x, params))
    ref = jax.block_until_ready(_ref_forward(x, params))

    assert out.shape == ref.shape == (N, planes * 4, S, S)
    out32 = out.astype(jnp.float32)
    max_err = float(jnp.max(jnp.abs(out32 - ref)))
    # bf16 activations/weights/output vs. f32 reference -> relaxed tolerance.
    assert jnp.allclose(out32, ref, atol=5e-2, rtol=5e-2), f"max err {max_err}"

    print("KERNEL_OK")
</pallas_src>

<mosaic_0001>
module attributes {stable_mosaic.version = 11 : i64} {
  func.func @_bottleneck_kernel(%arg0: i32, %arg1: memref<1x256x64xbf16, #tpu.memory_space<vmem>>, %arg2: memref<64x16xbf16, #tpu.memory_space<vmem>>, %arg3: memref<1x16xf32, #tpu.memory_space<vmem>>, %arg4: memref<144x16xbf16, #tpu.memory_space<vmem>>, %arg5: memref<1x16xf32, #tpu.memory_space<vmem>>, %arg6: memref<16x64xbf16, #tpu.memory_space<vmem>>, %arg7: memref<1x64xf32, #tpu.memory_space<vmem>>, %arg8: memref<1x256x64xbf16, #tpu.memory_space<vmem>>) attributes {dimension_semantics = [#tpu.dimension_semantics<parallel>], iteration_bounds = array<i64: 2>, scalar_prefetch = 0 : i64, scratch_operands = 0 : i64, tpu.core_type = #tpu.core_type<tc>, window_params = [{transform_indices = @transform_0, window_bounds = array<i64: 1, 256, 64>}, {pipeline_mode = #tpu.pipeline_mode<synchronous>, transform_indices = @transform_1, window_bounds = array<i64: 64, 16>}, {pipeline_mode = #tpu.pipeline_mode<synchronous>, transform_indices = @transform_2, window_bounds = array<i64: 1, 16>}, {pipeline_mode = #tpu.pipeline_mode<synchronous>, transform_indices = @transform_3, window_bounds = array<i64: 144, 16>}, {pipeline_mode = #tpu.pipeline_mode<synchronous>, transform_indices = @transform_4, window_bounds = array<i64: 1, 16>}, {pipeline_mode = #tpu.pipeline_mode<synchronous>, transform_indices = @transform_5, window_bounds = array<i64: 16, 64>}, {pipeline_mode = #tpu.pipeline_mode<synchronous>, transform_indices = @transform_6, window_bounds = array<i64: 1, 64>}, {transform_indices = @transform_7, window_bounds = array<i64: 1, 256, 64>}]} {
    %c0 = arith.constant 0 : index
    %c0_0 = arith.constant 0 : index
    %c0_1 = arith.constant 0 : index
    %0 = vector.load %arg1[%c0, %c0_0, %c0_1] : memref<1x256x64xbf16, #tpu.memory_space<vmem>>, vector<1x256x64xbf16>
    %1 = vector.shape_cast %0 : vector<1x256x64xbf16> to vector<256x64xbf16>
    %c0_2 = arith.constant 0 : index
    %c0_3 = arith.constant 0 : index
    %2 = vector.load %arg2[%c0_2, %c0_3] : memref<64x16xbf16, #tpu.memory_space<vmem>>, vector<64x16xbf16>
    %cst = arith.constant dense<0.000000e+00> : vector<256x16xf32>
    %3 = tpu.matmul %1, %2, %cst {dimension_numbers = #tpu.dot_dimension_numbers<[1], [0], [0], [1], [0, 0, 1, 1], [], []>} : vector<256x64xbf16>, vector<64x16xbf16>, vector<256x16xf32> -> vector<256x16xf32>
    %c0_4 = arith.constant 0 : index
    %c0_5 = arith.constant 0 : index
    %4 = vector.load %arg3[%c0_4, %c0_5] : memref<1x16xf32, #tpu.memory_space<vmem>>, vector<1x16xf32>
    %5 = vector.broadcast %4 : vector<1x16xf32> to vector<256x16xf32>
    %6 = arith.addf %3, %5 : vector<256x16xf32>
    %cst_6 = arith.constant 0.000000e+00 : f32
    %7 = vector.broadcast %cst_6 : f32 to vector<256x16xf32>
    %8 = arith.maximumf %6, %7 : vector<256x16xf32>
    %9 = tpu.iota {dimensions = array<i32: 0>} : vector<256x1xi32>
    %c15_i32 = arith.constant 15 : i32
    %10 = vector.broadcast %c15_i32 : i32 to vector<256x1xi32>
    %11 = arith.andi %9, %10 : vector<256x1xi32>
    %c17_i32 = arith.constant 17 : i32
    %12 = tpu.dynamic_rotate %8 by %c17_i32 dim 0 : vector<256x16xf32>, i32 -> vector<256x16xf32>
    %c16_i32 = arith.constant 16 : i32
    %13 = vector.broadcast %c16_i32 : i32 to vector<256x1xi32>
    %14 = arith.cmpi sge, %9, %13 : vector<256x1xi32>
    %c1_i32 = arith.constant 1 : i32
    %15 = vector.broadcast %c1_i32 : i32 to vector<256x1xi32>
    %16 = arith.cmpi sge, %11, %15 : vector<256x1xi32>
    %17 = arith.andi %14, %16 : vector<256x1xi1>
    %cst_7 = arith.constant 0.000000e+00 : f32
    %18 = vector.shape_cast %17 : vector<256x1xi1> to vector<256x1xi1>
    %19 = vector.broadcast %18 : vector<256x1xi1> to vector<256x16xi1>
    %20 = vector.broadcast %cst_7 : f32 to vector<256x16xf32>
    %21 = arith.select %19, %12, %20 : vector<256x16xi1>, vector<256x16xf32>
    %22 = arith.truncf %21 : vector<256x16xf32> to vector<256x16xbf16>
    %c16_i32_8 = arith.constant 16 : i32
    %23 = tpu.dynamic_rotate %8 by %c16_i32_8 dim 0 : vector<256x16xf32>, i32 -> vector<256x16xf32>
    %c16_i32_9 = arith.constant 16 : i32
    %24 = vector.broadcast %c16_i32_9 : i32 to vector<256x1xi32>
    %25 = arith.cmpi sge, %9, %24 : vector<256x1xi32>
    %cst_10 = arith.constant 0.000000e+00 : f32
    %26 = vector.shape_cast %25 : vector<256x1xi1> to vector<256x1xi1>
    %27 = vector.broadcast %26 : vector<256x1xi1> to vector<256x16xi1>
    %28 = vector.broadcast %cst_10 : f32 to vector<256x16xf32>
    %29 = arith.select %27, %23, %28 : vector<256x16xi1>, vector<256x16xf32>
    %30 = arith.truncf %29 : vector<256x16xf32> to vector<256x16xbf16>
    %c15_i32_11 = arith.constant 15 : i32
    %31 = tpu.dynamic_rotate %8 by %c15_i32_11 dim 0 : vector<256x16xf32>, i32 -> vector<256x16xf32>
    %c16_i32_12 = arith.constant 16 : i32
    %32 = vector.broadcast %c16_i32_12 : i32 to vector<256x1xi32>
    %33 = arith.cmpi sge, %9, %32 : vector<256x1xi32>
    %c14_i32 = arith.constant 14 : i32
    %34 = vector.broadcast %c14_i32 : i32 to vector<256x1xi32>
    %35 = arith.cmpi sle, %11, %34 : vector<256x1xi32>
    %36 = arith.andi %33, %35 : vector<256x1xi1>
    %cst_13 = arith.constant 0.000000e+00 : f32
    %37 = vector.shape_cast %36 : vector<256x1xi1> to vector<256x1xi1>
    %38 = vector.broadcast %37 : vector<256x1xi1> to vector<256x16xi1>
    %39 = vector.broadcast %cst_13 : f32 to vector<256x16xf32>
    %40 = arith.select %38, %31, %39 : vector<256x16xi1>, vector<256x16xf32>
    %41 = arith.truncf %40 : vector<256x16xf32> to vector<256x16xbf16>
    %c1_i32_14 = arith.constant 1 : i32
    %42 = tpu.dynamic_rotate %8 by %c1_i32_14 dim 0 : vector<256x16xf32>, i32 -> vector<256x16xf32>
    %c1_i32_15 = arith.constant 1 : i32
    %43 = vector.broadcast %c1_i32_15 : i32 to vector<256x1xi32>
    %44 = arith.cmpi sge, %11, %43 : vector<256x1xi32>
    %cst_16 = arith.constant 0.000000e+00 : f32
    %45 = vector.shape_cast %44 : vector<256x1xi1> to vector<256x1xi1>
    %46 = vector.broadcast %45 : vector<256x1xi1> to vector<256x16xi1>
    %47 = vector.broadcast %cst_16 : f32 to vector<256x16xf32>
    %48 = arith.select %46, %42, %47 : vector<256x16xi1>, vector<256x16xf32>
    %49 = arith.truncf %48 : vector<256x16xf32> to vector<256x16xbf16>
    %50 = arith.truncf %8 : vector<256x16xf32> to vector<256x16xbf16>
    %c255_i32 = arith.constant 255 : i32
    %51 = tpu.dynamic_rotate %8 by %c255_i32 dim 0 : vector<256x16xf32>, i32 -> vector<256x16xf32>
    %c14_i32_17 = arith.constant 14 : i32
    %52 = vector.broadcast %c14_i32_17 : i32 to vector<256x1xi32>
    %53 = arith.cmpi sle, %11, %52 : vector<256x1xi32>
    %cst_18 = arith.constant 0.000000e+00 : f32
    %54 = vector.shape_cast %53 : vector<256x1xi1> to vector<256x1xi1>
    %55 = vector.broadcast %54 : vector<256x1xi1> to vector<256x16xi1>
    %56 = vector.broadcast %cst_18 : f32 to vector<256x16xf32>
    %57 = arith.select %55, %51, %56 : vector<256x16xi1>, vector<256x16xf32>
    %58 = arith.truncf %57 : vector<256x16xf32> to vector<256x16xbf16>
    %c241_i32 = arith.constant 241 : i32
    %59 = tpu.dynamic_rotate %8 by %c241_i32 dim 0 : vector<256x16xf32>, i32 -> vector<256x16xf32>
    %c240_i32 = arith.constant 240 : i32
    %60 = vector.broadcast %c240_i32 : i32 to vector<256x1xi32>
    %61 = arith.cmpi slt, %9, %60 : vector<256x1xi32>
    %c1_i32_19 = arith.constant 1 : i32
    %62 = vector.broadcast %c1_i32_19 : i32 to vector<256x1xi32>
    %63 = arith.cmpi sge, %11, %62 : vector<256x1xi32>
    %64 = arith.andi %61, %63 : vector<256x1xi1>
    %cst_20 = arith.constant 0.000000e+00 : f32
    %65 = vector.shape_cast %64 : vector<256x1xi1> to vector<256x1xi1>
    %66 = vector.broadcast %65 : vector<256x1xi1> to vector<256x16xi1>
    %67 = vector.broadcast %cst_20 : f32 to vector<256x16xf32>
    %68 = arith.select %66, %59, %67 : vector<256x16xi1>, vector<256x16xf32>
    %69 = arith.truncf %68 : vector<256x16xf32> to vector<256x16xbf16>
    %c240_i32_21 = arith.constant 240 : i32
    %70 = tpu.dynamic_rotate %8 by %c240_i32_21 dim 0 : vector<256x16xf32>, i32 -> vector<256x16xf32>
    %c240_i32_22 = arith.constant 240 : i32
    %71 = vector.broadcast %c240_i32_22 : i32 to vector<256x1xi32>
    %72 = arith.cmpi slt, %9, %71 : vector<256x1xi32>
    %cst_23 = arith.constant 0.000000e+00 : f32
    %73 = vector.shape_cast %72 : vector<256x1xi1> to vector<256x1xi1>
    %74 = vector.broadcast %73 : vector<256x1xi1> to vector<256x16xi1>
    %75 = vector.broadcast %cst_23 : f32 to vector<256x16xf32>
    %76 = arith.select %74, %70, %75 : vector<256x16xi1>, vector<256x16xf32>
    %77 = arith.truncf %76 : vector<256x16xf32> to vector<256x16xbf16>
    %c239_i32 = arith.constant 239 : i32
    %78 = tpu.dynamic_rotate %8 by %c239_i32 dim 0 : vector<256x16xf32>, i32 -> vector<256x16xf32>
    %c240_i32_24 = arith.constant 240 : i32
    %79 = vector.broadcast %c240_i32_24 : i32 to vector<256x1xi32>
    %80 = arith.cmpi slt, %9, %79 : vector<256x1xi32>
    %c14_i32_25 = arith.constant 14 : i32
    %81 = vector.broadcast %c14_i32_25 : i32 to vector<256x1xi32>
    %82 = arith.cmpi sle, %11, %81 : vector<256x1xi32>
    %83 = arith.andi %80, %82 : vector<256x1xi1>
    %cst_26 = arith.constant 0.000000e+00 : f32
    %84 = vector.shape_cast %83 : vector<256x1xi1> to vector<256x1xi1>
    %85 = vector.broadcast %84 : vector<256x1xi1> to vector<256x16xi1>
    %86 = vector.broadcast %cst_26 : f32 to vector<256x16xf32>
    %87 = arith.select %85, %78, %86 : vector<256x16xi1>, vector<256x16xf32>
    %88 = arith.truncf %87 : vector<256x16xf32> to vector<256x16xbf16>
    %89 = tpu.concatenate %22, %30, %41, %49, %50, %58, %69, %77, %88 in 1 : vector<256x16xbf16>, vector<256x16xbf16>, vector<256x16xbf16>, vector<256x16xbf16>, vector<256x16xbf16>, vector<256x16xbf16>, vector<256x16xbf16>, vector<256x16xbf16>, vector<256x16xbf16> -> vector<256x144xbf16>
    %c0_27 = arith.constant 0 : index
    %c0_28 = arith.constant 0 : index
    %90 = vector.load %arg4[%c0_27, %c0_28] : memref<144x16xbf16, #tpu.memory_space<vmem>>, vector<144x16xbf16>
    %cst_29 = arith.constant dense<0.000000e+00> : vector<256x16xf32>
    %91 = tpu.matmul %89, %90, %cst_29 {dimension_numbers = #tpu.dot_dimension_numbers<[1], [0], [0], [1], [0, 0, 1, 1], [], []>} : vector<256x144xbf16>, vector<144x16xbf16>, vector<256x16xf32> -> vector<256x16xf32>
    %c0_30 = arith.constant 0 : index
    %c0_31 = arith.constant 0 : index
    %92 = vector.load %arg5[%c0_30, %c0_31] : memref<1x16xf32, #tpu.memory_space<vmem>>, vector<1x16xf32>
    %93 = vector.broadcast %92 : vector<1x16xf32> to vector<256x16xf32>
    %94 = arith.addf %91, %93 : vector<256x16xf32>
    %cst_32 = arith.constant 0.000000e+00 : f32
    %95 = vector.broadcast %cst_32 : f32 to vector<256x16xf32>
    %96 = arith.maximumf %94, %95 : vector<256x16xf32>
    %97 = arith.truncf %96 : vector<256x16xf32> to vector<256x16xbf16>
    %c0_33 = arith.constant 0 : index
    %c0_34 = arith.constant 0 : index
    %98 = vector.load %arg6[%c0_33, %c0_34] : memref<16x64xbf16, #tpu.memory_space<vmem>>, vector<16x64xbf16>
    %cst_35 = arith.constant dense<0.000000e+00> : vector<256x64xf32>
    %99 = tpu.matmul %97, %98, %cst_35 {dimension_numbers = #tpu.dot_dimension_numbers<[1], [0], [0], [1], [0, 0, 1, 1], [], []>} : vector<256x16xbf16>, vector<16x64xbf16>, vector<256x64xf32> -> vector<256x64xf32>
    %c0_36 = arith.constant 0 : index
    %c0_37 = arith.constant 0 : index
    %100 = vector.load %arg7[%c0_36, %c0_37] : memref<1x64xf32, #tpu.memory_space<vmem>>, vector<1x64xf32>
    %101 = vector.broadcast %100 : vector<1x64xf32> to vector<256x64xf32>
    %102 = arith.addf %99, %101 : vector<256x64xf32>
    %103 = arith.extf %1 : vector<256x64xbf16> to vector<256x64xf32>
    %104 = arith.addf %102, %103 : vector<256x64xf32>
    %cst_38 = arith.constant 0.000000e+00 : f32
    %105 = vector.broadcast %cst_38 : f32 to vector<256x64xf32>
    %106 = arith.maximumf %104, %105 : vector<256x64xf32>
    %107 = arith.truncf %106 : vector<256x64xf32> to vector<256x64xbf16>
    %c0_39 = arith.constant 0 : index
    %c0_40 = arith.constant 0 : index
    %c0_41 = arith.constant 0 : index
    %108 = vector.load %arg8[%c0_39, %c0_40, %c0_41] : memref<1x256x64xbf16, #tpu.memory_space<vmem>>, vector<1x256x64xbf16>
    %109 = vector.shape_cast %108 : vector<1x256x64xbf16> to vector<256x64xbf16>
    %110 = vector.shape_cast %107 : vector<256x64xbf16> to vector<1x256x64xbf16>
    tpu.vector_store %arg8[%c0_39, %c0_40, %c0_41], %110 {strides = array<i32>} : memref<1x256x64xbf16, #tpu.memory_space<vmem>>, vector<1x256x64xbf16>,
    return
  }
  func.func @transform_0(%arg0: i32) -> (i32, i32, i32) {
    %c0_i32 = arith.constant 0 : i32
    %c0_i32_0 = arith.constant 0 : i32
    %c0_i32_1 = arith.constant 0 : i32
    return %arg0, %c0_i32, %c0_i32_0 : i32, i32, i32
  }
  func.func @transform_1(%arg0: i32) -> (i32, i32) {
    %c0_i32 = arith.constant 0 : i32
    %c0_i32_0 = arith.constant 0 : i32
    %c0_i32_1 = arith.constant 0 : i32
    return %c0_i32, %c0_i32_0 : i32, i32
  }
  func.func @transform_2(%arg0: i32) -> (i32, i32) {
    %c0_i32 = arith.constant 0 : i32
    %c0_i32_0 = arith.constant 0 : i32
    %c0_i32_1 = arith.constant 0 : i32
    return %c0_i32, %c0_i32_0 : i32, i32
  }
  func.func @transform_3(%arg0: i32) -> (i32, i32) {
    %c0_i32 = arith.constant 0 : i32
    %c0_i32_0 = arith.constant 0 : i32
    %c0_i32_1 = arith.constant 0 : i32
    return %c0_i32, %c0_i32_0 : i32, i32
  }
  func.func @transform_4(%arg0: i32) -> (i32, i32) {
    %c0_i32 = arith.constant 0 : i32
    %c0_i32_0 = arith.constant 0 : i32
    %c0_i32_1 = arith.constant 0 : i32
    return %c0_i32, %c0_i32_0 : i32, i32
  }
  func.func @transform_5(%arg0: i32) -> (i32, i32) {
    %c0_i32 = arith.constant 0 : i32
    %c0_i32_0 = arith.constant 0 : i32
    %c0_i32_1 = arith.constant 0 : i32
    return %c0_i32, %c0_i32_0 : i32, i32
  }
  func.func @transform_6(%arg0: i32) -> (i32, i32) {
    %c0_i32 = arith.constant 0 : i32
    %c0_i32_0 = arith.constant 0 : i32
    %c0_i32_1 = arith.constant 0 : i32
    return %c0_i32, %c0_i32_0 : i32, i32
  }
  func.func @transform_7(%arg0: i32) -> (i32, i32, i32) {
    %c0_i32 = arith.constant 0 : i32
    %c0_i32_0 = arith.constant 0 : i32
    %c0_i32_1 = arith.constant 0 : i32
    return %arg0, %c0_i32, %c0_i32_0 : i32, i32, i32
  }
}

</mosaic_0001>

<bundles_post_ra>
// kernel: bottleneck_forward.1
= control target key start
LH: loop header
LB: loop body
LE: loop exit
PB: predicated region body
PF: predicated region fallthrough
CT: control target
= control target key end

     0   :  { %12 = vsyncpa [#allocation3], 0  ;;  %s6178_s0 = inlined_call_operand.vmem [shape: bf16[2,256,64], index: 0, kind: input, shape index: {}]   ;;  %s6179_s1 = inlined_call_operand.vmem [shape: bf16[64,16], index: 1, kind: input, shape index: {}]   ;;  %s6180_s2 = inlined_call_operand.vmem [shape: f32[1,16], index: 2, kind: input, shape index: {}]   ;;  %s6181_s3 = inlined_call_operand.vmem [shape: bf16[144,16], index: 3, kind: input, shape index: {}]   ;;  %s6182_s4 = inlined_call_operand.vmem [shape: f32[1,16], index: 4, kind: input, shape index: {}]   ;;  %s6183_s5 = inlined_call_operand.vmem [shape: bf16[16,64], index: 5, kind: input, shape index: {}]   ;;  %s6184_s6 = inlined_call_operand.vmem [shape: f32[1,64], index: 6, kind: input, shape index: {}]   ;;  %s6185_s7 = inlined_call_operand.hbm [shape: bf16[2,256,64], index: 7, kind: output, shape index: {}]  }
   0x1   :  { %14 = vsyncpa [#allocation3 + $0x1], 0  ;;  %s4036_s24 = smov 0   ;;  %s4038_s25 = smov 0  }
   0x2   :  { %s4040_s26 = smov 0   ;;  %s4042_s27 = smov 0  }
   0x3 LB: > { %s4057_s28 = sadd.s32 4294967295, %s3983_s27   ;;  %s3525_s29 = sadd.s32 4294967294, %s3983_s27   ;;  %s3983_s27 = sphi %s4042_s27, %s6604_s27   ;;  %s3979_s26 = sphi %s4040_s26, %s6603_s26   ;;  %s3975_s25 = sphi %s4038_s25, %s6602_s25   ;;  %s3971_s24 = sphi %s4036_s24, %s6601_s24  }
   0x4   : > { %s4061_s30 = sadd.s32 1, %s3983_s27   ;;  %s179_s8 = sadd.s32 1, %s3979_s26 }
   0x5   : > { %s176_s9 = ssub.s32 %s3983_s27, %s4061_s30  ;;  %p189_p0 = scmp.ne.s32.totalorder %s3979_s26, %s3975_s25 }
   0x6   : > { %p177_p1 = scmp.eq.s32.totalorder %s176_s9, 0  ;;  %p190_p2 = scmp.eq.s32.totalorder %s4057_s28, 1 }
   0x7   : > { %p195_p3 = scmp.ne.s32.totalorder %s3975_s25, %s3971_s24  ;;  %p196_p4 = scmp.eq.s32.totalorder %s3525_s29, 1 }
   0x8   : > { %s4072_s10 = scalar_select %p177_p1, %s3979_s26, %s179_s8  }
   0x9   : > { %p4074_p5 = por %p190_p2, %p189_p0  ;;  %p4078_p6 = por %p196_p4, %p195_p3 }
   0xa   : > { %p3528_p7 = scmp.ge.s32.totalorder %s3983_s27, 1  ;;  %p240_p8 = scmp.lt.s32.totalorder %s3983_s27, 3 }
   0xc   : > { %p241_p9 = pnand %p3528_p7, %p240_p8 }
   0xe   : > { %244 = sbr.rel (%p241_p9) target bundleno = 1019 (0x3fb), region = 48 }
  0x13   : > { %v3861_v0 = vld [vmem:[%s6179_s1 + $0x18] sm:$0xff]   ;;  %p272_p10 = scmp.lt.s32.totalorder %s4057_s28, 1  ;;  %v3862_v1 = vld [vmem:[%s6179_s1 + $0x10] sm:$0xff]   ;;  %v3863_v2 = vld [vmem:[%s6179_s1 + $0x8] sm:$0xff]   ;;  %vm6217_vm0 = vcmask 523264   ;;  %v6186_v20 = vmov 0.0|0.0   ;;  %v671_v21 = vlaneseq }
  0x14   : > { %3720 = vmatprep.subr.bf16.mxu0 %v3861_v0  ;;  %v3864_v4 = vld [vmem:[%s6179_s1] sm:$0xff]   ;;  %s3986_s9 = smov 16   ;;  %s3987_s13 = smov 32   ;;  %v3881_v34 = vld [vmem:[%s6181_s3 + $0x38] sm:$0xff]   ;;  %v3988_v41 = vmov 0   ;;  %v3882_v49 = vld [vmem:[%s6181_s3 + $0x30] sm:$0xff]  }
  0x15   : > { %s273_s17 = scalar_select %p272_p10, %s4057_s28, 1  ;;  %3721 = vmatpush3.bf16.msra.mxu0 %v3861_v0  ;;  %2050 = vrot.lane.b32.xlu1 %v6186_v20, %s3986_s9  ;;  %v4142_v23 = vld [vmem:[%s6180_s2] ss:$0 sm:$0xff]  ;;  %v4144_v24 = vshrl.u32 %v671_v21, 7  ;;  %vm6218_vm5 = vcmask 130048  }
  0x16   : > { %3722 = vmatprep.subr.bf16.mxu0 %v3862_v1  ;;  %3794 = vmatprep.subr.bf16.mxu1 %v3988_v41  ;;  %s3990_s14 = smov 112   ;;  %s3992_s21 = smov 48  }
  0x17   : > { %s3649_s20 = sshll.u32 %s273_s17, 7  ;;  %v675_v30 = vadd.s32 24, %v4144_v24  ;;  %v673_v38 = vadd.s32 8, %v4144_v24  ;;  %vm1153_vm1 = vcmp.lt.s32.totalorder %v4144_v24, 7  ;;  %v4169_v44 = vadd.s32 16, %v4144_v24  ;;  %3803 = vmatpush1.bf16.msra.mxu1 %v3881_v34  ;;  %s3991_s17 = smov 80  }
  0x18   : > { %s4098_s23 = scalar_lea.vmem %s6178_s0, %s3649_s20  ;;  %3795 = vmatprep.subr.bf16.mxu1 %v3988_v41  ;;  %s3989_s20 = smov 64   ;;  %vm6220_vm3 = vcmp.lt.s32.totalorder %v4144_v24, 1 }
  0x19   : > { %v278_v3 = vld [vmem:[%s4098_s23] sm:$0xff]   ;;  %3723 = vmatpush3.bf16.msra.mxu0 %v3862_v1  ;;  %v280_v5 = vld [vmem:[%s4098_s23 + $0x8] sm:$0xff]   ;;  %v282_v6 = vld [vmem:[%s4098_s23 + $0x10] sm:$0xff]   ;;  %2098 = vrot.lane.b32.xlu1 %v6186_v20, %s3987_s13  ;;  %v707_v40 = vand.u32 15, %v675_v30  ;;  %v705_v54 = vand.u32 15, %v673_v38  ;;  %s3993_s16 = smov 96  }
  0x1a   : > { %3724 = vmatprep.subr.bf16.mxu0 %v3863_v2  ;;  %3728 = vmatprep.mubr.msk.bf16.mxu0 %vm6217_vm0, %v278_v3  ;;  %v284_v7 = vld [vmem:[%s4098_s23 + $0x18] sm:$0xff]   ;;  %v286_v8 = vld [vmem:[%s4098_s23 + $0x20] sm:$0xff]   ;;  %v288_v9 = vld [vmem:[%s4098_s23 + $0x28] sm:$0xff]   ;;  %s269_s29 = sand.u32 1, %s3975_s25  }
  0x1b   : > { %v290_v10 = vld [vmem:[%s4098_s23 + $0x30] sm:$0xff]   ;;  %v292_v11 = vld [vmem:[%s4098_s23 + $0x38] sm:$0xff]   ;;  %v294_v12 = vld [vmem:[%s4098_s23 + $0x40] sm:$0xff]   ;;  %vm4190_vm2 = vcmp.le.s32.totalorder %v707_v40, 14  ;;  %3804 = vmatpush1.bf16.msra.mxu1 %v3882_v49  ;;  %vm4226_vm4 = vcmp.le.s32.totalorder %v705_v54, 14  ;;  %v704_v40 = vand.u32 15, %v4144_v24 }
  0x1c   : > { %v296_v13 = vld [vmem:[%s4098_s23 + $0x48] sm:$0xff]   ;;  %v298_v14 = vld [vmem:[%s4098_s23 + $0x50] sm:$0xff]   ;;  %v300_v15 = vld [vmem:[%s4098_s23 + $0x58] sm:$0xff]   ;;  %3796 = vmatprep.subr.bf16.mxu1 %v3988_v41  ;;  %v678_v54 = vadd.s32 48, %v4144_v24  ;;  %s3529_s8 = sshll.u32 %s269_s29, 7 }
  0x1d   : > { %3725 = vmatpush3.bf16.msra.mxu0 %v3863_v2  ;;  %v302_v16 = vld [vmem:[%s4098_s23 + $0x60] sm:$0xff]   ;;  %v304_v17 = vld [vmem:[%s4098_s23 + $0x68] sm:$0xff]   ;;  %v306_v18 = vld [vmem:[%s4098_s23 + $0x70] sm:$0xff]   ;;  %vm4334_vm8 = vcmp.ge.s32.totalorder %v704_v40, 1  ;;  %s6019_s15 = scalar_lea.vmem [#allocation2], %s3529_s8 }
  0x1e   : > { %3726 = vmatprep.subr.bf16.mxu0 %v3864_v4  ;;  %v308_v19 = vld [vmem:[%s4098_s23 + $0x78] sm:$0xff]   ;;  %v3883_v2 = vld [vmem:[%s6181_s3 + $0x28] sm:$0xff]  }
  0x1f   : > { %3805 = vmatpush1.bf16.msra.mxu1 %v3883_v2 }
  0x20   : > { %3797 = vmatprep.subr.bf16.mxu1 %v3988_v41 }
  0x21   : > { %3727 = vmatpush3.bf16.msra.mxu0 %v3864_v4 }
  0x22   : > { %2759 = vmatprep.subr.bf16.mxu0 %v3988_v41 }
  0x24   : > { %3729 = vmatmul.mubr.msk.bf16.vlgmr.msra.gmra.mxu0 %vm6217_vm0, %v280_v5 }
  0x25   : > { %3732 = vmatprep.mubr.msk.bf16.mxu0 %vm6217_vm0, %v282_v6  ;;  %2760 = vmatpush1.bf16.msra.mxu0 %v3881_v34  ;;  %v706_v6 = vand.u32 15, %v4169_v44 }
  0x26   : > { %2761 = vmatprep.subr.bf16.mxu0 %v3988_v41 }
  0x27   : > { %vm4265_vm6 = vcmp.ge.s32.totalorder %v706_v6, 1  ;;  %v710_v6 = vand.u32 15, %v678_v54 }
  0x29   : > { %2762 = vmatpush1.bf16.msra.mxu0 %v3882_v49  ;;  %vm4400_vm10 = vcmp.ge.s32.totalorder %v710_v6, 1  ;;  %v4444_v6 = vadd.s32 144, %v4144_v24 }
  0x2a   : > { %2763 = vmatprep.subr.bf16.mxu0 %v3988_v41 }
  0x2b   : > { %6254 = vst [vmem:[#allocation8_spill] sm:$0xff] %v4444_v6 }
  0x2c   : > { %3733 = vmatmul.mubr.msk.bf16.gmra.mxu0 %vm6217_vm0, %v284_v7  ;;  %v677_v7 = vadd.s32 40, %v4144_v24 }
  0x2d   : > { %3736 = vmatprep.mubr.msk.bf16.mxu0 %vm6217_vm0, %v286_v8  ;;  %2764 = vmatpush1.bf16.msra.mxu0 %v3883_v2 }
  0x2e   : > { %2765 = vmatprep.subr.bf16.mxu0 %v3988_v41 }
  0x34   : > { %3737 = vmatmul.mubr.msk.bf16.gmra.mxu0 %vm6217_vm0, %v288_v9 }
  0x35   : > { %3740 = vmatprep.mubr.msk.bf16.mxu0 %vm6217_vm0, %v290_v10 }
  0x3c   : > { %3741 = vmatmul.mubr.msk.bf16.gmra.mxu0 %vm6217_vm0, %v292_v11 }
  0x3d   : > { %3744 = vmatprep.mubr.msk.bf16.mxu0 %vm6217_vm0, %v294_v12 }
  0x44   : > { %3745 = vmatmul.mubr.msk.bf16.gmra.mxu0 %vm6217_vm0, %v296_v13 }
  0x45   : > { %3748 = vmatprep.mubr.msk.bf16.mxu0 %vm6217_vm0, %v298_v14 }
  0x4c   : > { %3749 = vmatmul.mubr.msk.bf16.gmra.mxu0 %vm6217_vm0, %v300_v15 }
  0x4d   : > { %3752 = vmatprep.mubr.msk.bf16.mxu0 %vm6217_vm0, %v302_v16 }
  0x54   : > { %3753 = vmatmul.mubr.msk.bf16.gmra.mxu0 %vm6217_vm0, %v304_v17 }
  0x55   : > { %3756 = vmatprep.mubr.msk.bf16.mxu0 %vm6217_vm0, %v306_v18 }
  0x5c   : > { %3757 = vmatmul.mubr.msk.bf16.gmra.mxu0 %vm6217_vm0, %v308_v19  ;;  %v3884_v19 = vld [vmem:[%s6181_s3 + $0x20] sm:$0xff]  }
  0x5d   : > { %3806 = vmatpush1.bf16.msra.mxu1 %v3884_v19  ;;  %2766 = vmatpush1.bf16.msra.mxu0 %v3884_v19 }
  0x5e   : > { %3798 = vmatprep.subr.bf16.mxu1 %v3988_v41  ;;  %2767 = vmatprep.subr.bf16.mxu0 %v3988_v41 }
  0xe4   : > { %v3730_v22 = vpop.f32.mrf.mxu0 }
  0xe5   : > { %v521_v26 = vadd.f32 %v3730_v22, %v4142_v23 }
  0xe6   : > { %v512_v25 = vpop.f32.mrf.mxu0 }
  0xe7   : > { %v513_v27 = vadd.f32 %v4142_v23, %v512_v25  ;;  %v4156_v35 = vmax.f32 %v521_v26, 0.0 }
  0xe8   : > { %v3731_v28 = vpop.f32.mrf.mxu0 }
  0xe9   : > { %v524_v29 = vadd.f32 %v3731_v28, %v4142_v23  ;;  %v4158_v36 = vmax.f32 %v513_v27, 0.0  ;;  %v1123_v50 = vrot.slane %v4156_v35, 1  ;;  %v738_v8 = vrot.slane %v4156_v35, 7 }
  0xea   : > { %v515_v31 = vpop.f32.mrf.mxu0  ;;  %v709_v27 = vand.u32 15, %v677_v7 }
  0xeb   : > { %v4150_v32 = vmax.f32 %v524_v29, 0.0  ;;  %v516_v33 = vadd.f32 %v4142_v23, %v515_v31  ;;  %6235 = vst [vmem:[#allocation5_spill] sm:$0xff] %v4158_v36  ;;  %v6189_v51 = vrot.slane %v4158_v36, 7  ;;  %v6188_v55 = vrot.slane %v4158_v36, 1 }
  0xec   : > { %v3734_v37 = vpop.f32.mrf.mxu0  ;;  %vm4299_vm7 = vcmp.le.s32.totalorder %v709_v27, 14 }
  0xed   : > { %v4161_v39 = vmax.f32 %v516_v33, 0.0  ;;  %v1107_v43 = vpack.c.bf16 %v4150_v32, %v4156_v35  ;;  %v537_v47 = vadd.f32 %v3734_v37, %v4142_v23  ;;  %v1124_v58 = vrot.slane %v4150_v32, 1  ;;  %v3885_v35 = vld [vmem:[%s6181_s3 + $0x18] sm:$0xff]  }
  0xee   : > { %v528_v42 = vpop.f32.mrf.mxu0  ;;  %v739_v28 = vrot.slane %v4150_v32, 7  ;;  %3807 = vmatpush1.bf16.msra.mxu1 %v3885_v35  ;;  %2768 = vmatpush1.bf16.msra.mxu0 %v3885_v35 }
  0xef   : > { %v737_v45 = vrot.slane %v4161_v39, 7  ;;  %v1122_v46 = vrot.slane %v4161_v39, 1  ;;  %v529_v48 = vadd.f32 %v4142_v23, %v528_v42  ;;  %2196 = vrot.lane.b32.xlu1 %v1107_v43, %s3989_s20  ;;  %v1106_v53 = vpack.c.bf16 %v4161_v39, %v4158_v36  ;;  %3799 = vmatprep.subr.bf16.mxu1 %v3988_v41 }
  0xf0   : > { %v4183_v52 = vpop.f32.mrf.mxu0  ;;  %v4207_v62 = vmax.f32 %v537_v47, 0.0  ;;  %v1182_v13 = vsel %vm1153_vm1, %v1123_v50, %v1124_v58  ;;  %v6242_v39 = vmov 0  ;;  %v4308_v42 = vsel %vm6220_vm3, %v738_v8, %v739_v28  ;;  %2769 = vmatprep.subr.bf16.mxu0 %v3988_v41 }
  0xf1   : > { %v4188_v56 = vmax.f32 %v529_v48, 0.0  ;;  %2052 = vrot.lane.b32.xlu0 %v1106_v53, %s3986_s9  ;;  %v4199_v60 = vsel %vm1153_vm1, %v1122_v46, %v1123_v50  ;;  %v4205_v61 = vsel %vm6220_vm3, %v6189_v51, %v737_v45  ;;  %v4215_v1 = vsel %vm1153_vm1, %v6188_v55, %v1122_v46  ;;  %v3886_v48 = vld [vmem:[%s6181_s3 + $0x10] sm:$0xff]  }
  0xf2   : > { %v531_v59 = vpop.f32.mrf.mxu0  ;;  %v1317_v4 = vsel %vm4190_vm2, %v4199_v60, 0.0  ;;  %v6191_v16 = vrot.slane %v4207_v62, 1  ;;  %v4263_v25 = vsel %vm6220_vm3, %v737_v45, %v738_v8  ;;  %v6243_v39 = vsel %vm4299_vm7, 4294967295, %v6242_v39  ;;  %3808 = vmatpush1.bf16.msra.mxu1 %v3886_v48  ;;  %2770 = vmatpush1.bf16.msra.mxu0 %v3886_v48 }
  0xf3   : > { %v1125_v63 = vrot.slane %v4188_v56, 1  ;;  %v532_v0 = vadd.f32 %v4142_v23, %v531_v59  ;;  %2054 = vrot.lane.b32.xlu1 %v1107_v43, %s3986_s9  ;;  %v1347_v11 = vpack.c.bf16 %v1317_v4, %v4215_v1  ;;  %v1428_v34 = vsel %vm4265_vm6, %v4263_v25, 0.0  ;;  %6244 = vst [vmem:[#allocation6_spill] sm:$0xff] %v6243_v39  ;;  %3800 = vmatprep.subr.bf16.mxu1 %v3988_v41 }
  0xf4   : > { %v4221_v3 = vpop.f32.mrf.mxu0  ;;  %v1459_v45 = vpack.c.bf16 %v4308_v42, %v1428_v34  ;;  %v1555_v47 = vsel %vm4226_vm4, %v4199_v60, 0.0  ;;  %v540_v57 = vadd.f32 %v4183_v52, %v4142_v23  ;;  %v3887_v52 = vld [vmem:[%s6181_s3 + $0x8] sm:$0xff]   ;;  %2771 = vmatprep.subr.bf16.mxu0 %v3988_v41  ;;  %v4469_v55 = vadd.s32 152, %v4144_v24 }
  0xf5   : > { %v4236_v9 = vsel %vm1153_vm1, %v1124_v58, %v1125_v63  ;;  %v4238_v10 = vmax.f32 %v532_v0, 0.0  ;;  %2100 = vrot.lane.b32.xlu0 %v1347_v11, %s3987_s13  ;;  %v679_v58 = vadd.s32 56, %v4144_v24  ;;  %v1730_v0 = vsel %vm4334_vm8, %v4263_v25, 0.0 }
  0xf6   : > { %v4242_v12 = vpop.f32.mrf.mxu0  ;;  %v1987_v14 = vsel %vm4226_vm4, %v4236_v9, 0.0  ;;  %v1557_v15 = vsel %vm4190_vm2, %v4236_v9, 0.0  ;;  %v1319_v46 = vsel %vm4299_vm7, %v4236_v9, 0.0  ;;  %v4361_v7 = vmax.f32 %v540_v57, 0.0  ;;  %3809 = vmatpush1.bf16.msra.mxu1 %v3887_v52  ;;  %2772 = vmatpush1.bf16.msra.mxu0 %v3887_v52  ;;  %6257 = vst [vmem:[#allocation11_spill] sm:$0xff] %v4469_v55 }
  0xf7   : > { %v1126_v17 = vrot.slane %v4238_v10, 1  ;;  %v2018_v18 = vpack.c.bf16 %v1987_v14, %v1182_v13  ;;  %2338 = vrot.lane.b32.xlu1 %v1107_v43, %s3990_s14  ;;  %v1587_v22 = vpack.c.bf16 %v1557_v15, %v1182_v13  ;;  %v4315_v43 = vpack.c.bf16 %v4238_v10, %v4188_v56  ;;  %3801 = vmatprep.subr.bf16.mxu1 %v3988_v41 }
  0xf8   : > { %v4259_v21 = vpop.f32.mrf.mxu0  ;;  %v1348_v59 = vpack.c.bf16 %v1319_v46, %v1182_v13  ;;  %v741_v2 = vrot.slane %v4238_v10, 7  ;;  %v545_v4 = vadd.f32 %v4142_v23, %v4242_v12  ;;  %v711_v8 = vand.u32 15, %v679_v58  ;;  %2773 = vmatprep.subr.bf16.mxu0 %v3988_v41 }
  0xf9   : > { %3579 = vmatprep.mubr.msk.bf16.mxu0 %vm6218_vm5, %v2018_v18  ;;  %v4275_v29 = vsel %vm1153_vm1, %v1126_v17, %v6191_v16  ;;  %v4279_v30 = vsel %vm1153_vm1, %v1125_v63, %v1126_v17  ;;  %2244 = vrot.lane.b32.xlu0 %v1587_v22, %s3991_s17  ;;  %v1586_v63 = vpack.c.bf16 %v1555_v47, %v4215_v1  ;;  %v681_v9 = vadd.s32 72, %v4144_v24  ;;  %v3888_v18 = vld [vmem:[%s6181_s3] sm:$0xff]  }
  0xfa   : > { %v4282_v31 = vpop.f32.mrf.mxu0  ;;  %v1989_v33 = vsel %vm4190_vm2, %v4275_v29, 0.0  ;;  %v4365_v11 = vadd.s32 64, %v4144_v24  ;;  %v742_v12 = vrot.slane %v4207_v62, 7  ;;  %v1762_v14 = vpack.c.bf16 %v4308_v42, %v1730_v0  ;;  %3810 = vmatpush1.bf16.msra.mxu1 %v3888_v18  ;;  %2774 = vmatpush1.bf16.msra.mxu0 %v3888_v18 }
  0xfb   : > { %2194 = vrot.lane.b32.xlu1 %v1106_v53, %s3989_s20  ;;  %v2019_v38 = vpack.c.bf16 %v1989_v33, %v4279_v30  ;;  %v676_v53 = vadd.s32 32, %v4144_v24  ;;  %v4374_v15 = vadd.s32 80, %v4144_v24  ;;  %v4377_v17 = vadd.s32 88, %v4144_v24  ;;  %3802 = vmatprep.subr.bf16.mxu1 %v3988_v41 }
  0xfc   : > { %v4296_v37 = vpop.f32.mrf.mxu0  ;;  %v4382_v19 = vmax.f32 %v545_v4, 0.0  ;;  %v4393_v27 = vsel %vm6220_vm3, %v741_v2, %v742_v12  ;;  %v6190_v33 = vrot.slane %v4361_v7, 7  ;;  %vm4411_vm11 = vcmp.le.s32.totalorder %v711_v8, 14  ;;  %2789 = vmatprep.subr.bf16.mxu0 %v3988_v41 }
  0xfd   : > { %3580 = vmatprep.mubr.msk.bf16.mxu1 %vm6218_vm5, %v2019_v38  ;;  %2340 = vrot.lane.b32.xlu0 %v4315_v43, %s3990_s14  ;;  %v708_v5 = vand.u32 15, %v676_v53  ;;  %v6251_v46 = vmov 0  ;;  %v713_v47 = vand.u32 15, %v681_v9  ;;  %v4421_v57 = vadd.s32 104, %v4144_v24 }
  0xfe   : > { %v4317_v44 = vpop.f32.mrf.mxu0  ;;  %v6252_v46 = vsel %vm4411_vm11, 4294967295, %v6251_v46  ;;  %v4424_v58 = vadd.s32 96, %v4144_v24  ;;  %v553_v0 = vadd.f32 %v4221_v3, %v4142_v23  ;;  %v6192_v52 = vrot.slane %v4382_v19, 1 }
  0xff   : > { %2148 = vrot.lane.b32.xlu1 %v1459_v45, %s3992_s21  ;;  %vm4396_vm9 = vcmp.ge.s32.totalorder %v708_v5, 1  ;;  %v1109_v45 = vpack.c.bf16 %v4361_v7, %v4207_v62  ;;  %6253 = vst [vmem:[#allocation7_spill] sm:$0xff] %v6252_v46  ;;  %v4441_v5 = vadd.s32 120, %v4144_v24  ;;  %v4450_v3 = vsel %vm6220_vm3, %v742_v12, %v6190_v33 }
 0x100   : > { %v4332_v49 = vpop.f32.mrf.mxu0  ;;  %v1734_v54 = vsel %vm4396_vm9, %v4393_v27, 0.0  ;;  %v4453_v8 = vadd.s32 136, %v4144_v24  ;;  %v4460_v9 = vadd.s32 232, %v4144_v24  ;;  %v1128_v18 = vrot.slane %v4361_v7, 1 }
 0x101   : > { %2102 = vrot.lane.b32.xlu0 %v1348_v59, %s3987_s13  ;;  %v4427_v59 = vadd.s32 112, %v4144_v24  ;;  %v1764_v12 = vpack.c.bf16 %v4450_v3, %v1734_v54  ;;  %v556_v51 = vadd.f32 %v4259_v21, %v4142_v23  ;;  %v1432_v33 = vsel %vm4400_vm10, %v4393_v27, 0.0 }
 0x102   : > { %v4345_v60 = vpop.f32.mrf.mxu0  ;;  %6255 = vst [vmem:[#allocation9_spill] sm:$0xff] %v4453_v8  ;;  %6256 = vst [vmem:[#allocation10_spill] sm:$0xff] %v4460_v9  ;;  %vm4476_vm12 = vcmp.le.s32.totalorder %v713_v47, 14  ;;  %v4482_v53 = vmax.f32 %v553_v0, 0.0  ;;  %v4492_v47 = vsel %vm1153_vm1, %v1128_v18, %v6192_v52  ;;  %v1461_v38 = vpack.c.bf16 %v4450_v3, %v1432_v33 }
 0x103   : > { %2242 = vrot.lane.b32.xlu1 %v1586_v63, %s3991_s17  ;;  %v3889_v63 = vld [vmem:[%s6181_s3 + $0x40] sm:$0xff]   ;;  %6260 = vst [vmem:[#allocation12_spill] sm:$0xff] %v4492_v47  ;;  %v4512_v52 = vmax.f32 %v556_v51, 0.0  ;;  %v1561_v33 = vsel %vm4411_vm11, %v4492_v47, 0.0  ;;  %v572_v51 = vadd.f32 %v4332_v49, %v4142_v23  ;;  %v4535_v10 = vadd.s32 168, %v4144_v24 }
 0x104   : > { %v4359_v1 = vpop.f32.mrf.mxu0  ;;  %3811 = vmatpush2.bf16.msra.mxu1 %v3889_v63  ;;  %2790 = vmatpush2.bf16.msra.mxu0 %v3889_v63  ;;  %v548_v63 = vadd.f32 %v4142_v23, %v4282_v31  ;;  %v561_v31 = vadd.f32 %v4142_v23, %v4317_v44  ;;  %v6261_v54 = vrot.slane %v4207_v62, 1  ;;  %v6276_v46 = vand.u32 15, %v4421_v57 }
 0x105   : > { %2198 = vrot.lane.b32.xlu0 %v4315_v43, %s3989_s20  ;;  %v6295_v34 = vrot.slane %v4158_v36, 7 }
 0x106   : > { %v4370_v13 = vpop.f32.mrf.mxu0  ;;  %v4544_v44 = vsel %vm1153_vm1, %v6261_v54, %v1128_v18  ;;  %v585_v18 = vadd.f32 %v4359_v1, %v4142_v23  ;;  %v1559_v54 = vsel %vm4299_vm7, %v4275_v29, 0.0  ;;  %vm4657_vm2 = vcmp.le.s32.totalorder %v6276_v46, 14 }
 0x107   : > { %2290 = vrot.lane.b32.xlu1 %v1762_v14, %s3993_s16  ;;  %v740_v14 = vrot.slane %v4188_v56, 7  ;;  %6262 = vst [vmem:[#allocation13_spill] sm:$0xff] %v4544_v44  ;;  %v1589_v0 = vpack.c.bf16 %v1561_v33, %v4544_v44  ;;  %v4567_v33 = vmax.f32 %v572_v51, 0.0 }
 0x108   : > { %v4387_v22 = vpop.f32.mrf.mxu0  ;;  %v4609_v9 = vmax.f32 %v585_v18, 0.0  ;;  %v1321_v18 = vsel %vm4411_vm11, %v4275_v29, 0.0 }
 0x109   : > { %2056 = vrot.lane.b32.xlu0 %v4315_v43, %s3986_s9  ;;  %v4456_v43 = vadd.s32 128, %v4144_v24  ;;  %v4508_v56 = vsel %vm6220_vm3, %v739_v28, %v740_v14  ;;  %v4523_v32 = vsel %vm6220_vm3, %v740_v14, %v741_v2  ;;  %v4538_v14 = vmax.f32 %v548_v63, 0.0 }
 0x10a   : > { %v4407_v40 = vpop.f32.mrf.mxu0  ;;  %v1732_v49 = vsel %vm4265_vm6, %v4508_v56, 0.0  ;;  %v1323_v28 = vsel %vm4476_vm12, %v4492_v47, 0.0  ;;  %6269 = vst [vmem:[#allocation14_spill] sm:$0xff] %v4609_v9  ;;  %v6336_v50 = vld [vmem:[#allocation12_spill] sm:$0xff] }
 0x10b   : > { %2342 = vrot.lane.b32.xlu1 %v1109_v45, %s3990_s14  ;;  %v1763_v63 = vpack.c.bf16 %v4523_v32, %v1732_v49  ;;  %v580_v6 = vadd.f32 %v4142_v23, %v4407_v40  ;;  %v1349_v40 = vpack.c.bf16 %v1321_v18, %v4279_v30  ;;  %v6280_v18 = vrot.slane %v4482_v53, 7 }
 0x10c   : > { %v4438_v4 = vpop.f32.mrf.mxu0 }
 0x10d   : > { %2294 = vrot.lane.b32.xlu0 %v1764_v12, %s3993_s16  ;;  %v569_v12 = vadd.f32 %v4296_v37, %v4142_v23 }
 0x10e   : > { %v4466_v20 = vpop.f32.mrf.mxu0 }
 0x10f   : > { %2200 = vrot.lane.b32.xlu1 %v1109_v45, %s3989_s20  ;;  %v4557_v2 = vmax.f32 %v569_v12, 0.0  ;;  %v6263_v12 = vand.u32 15, %v4365_v11  ;;  %v6266_v11 = vand.u32 15, %v4374_v15 }
 0x110   : > { %v4486_v21 = vpop.f32.mrf.mxu0 }
 0x111   : > { %2152 = vrot.lane.b32.xlu0 %v1461_v38, %s3992_s21  ;;  %vm4575_vm13 = vcmp.ge.s32.totalorder %v6263_v12, 1  ;;  %vm4591_vm14 = vcmp.ge.s32.totalorder %v6266_v11, 1  ;;  %v4599_v38 = vpack.c.bf16 %v4538_v14, %v4382_v19  ;;  %v6270_v11 = vand.u32 15, %v4377_v17 }
 0x112   : > { %v4502_v16 = vpop.f32.mrf.mxu0  ;;  %v1588_v17 = vpack.c.bf16 %v1559_v54, %v4279_v30  ;;  %v4676_v57 = vpack.c.bf16 %v4567_v33, %v4557_v2 }
 0x113   : > { %2058 = vrot.lane.b32.xlu1 %v1109_v45, %s3986_s9  ;;  %v564_v45 = vadd.f32 %v4142_v23, %v4345_v60  ;;  %v4565_v60 = vmax.f32 %v561_v31, 0.0  ;;  %v745_v31 = vrot.slane %v4538_v14, 7  ;;  %vm4626_vm15 = vcmp.le.s32.totalorder %v6270_v11, 14 }
 0x114   : > { %v4532_v37 = vpop.f32.mrf.mxu0  ;;  %v6274_v11 = vrot.slane %v4482_v53, 7 }
 0x115   : > { %2248 = vrot.lane.b32.xlu0 %v1589_v0, %s3991_s17  ;;  %v577_v0 = vadd.f32 %v4142_v23, %v4370_v13  ;;  %v4595_v62 = vmax.f32 %v564_v45, 0.0  ;;  %v588_v45 = vadd.f32 %v4387_v22, %v4142_v23 }
 0x116   : > { %v4553_v48 = vpop.f32.mrf.mxu0  ;;  %v4645_v55 = vsel %vm6220_vm3, %v745_v31, %v6274_v11  ;;  %v601_v11 = vadd.f32 %v4438_v4, %v4142_v23  ;;  %v4679_v4 = vmax.f32 %v580_v6, 0.0 }
 0x117   : > { %2292 = vrot.lane.b32.xlu1 %v1763_v63, %s3993_s16  ;;  %v1430_v63 = vsel %vm4396_vm9, %v4508_v56, 0.0  ;;  %v4631_v15 = vmax.f32 %v577_v0, 0.0  ;;  %6275 = vst [vmem:[#allocation16_spill] sm:$0xff] %v4645_v55  ;;  %v4648_v39 = vmax.f32 %v588_v45, 0.0  ;;  %v6279_v45 = vrot.slane %v4512_v52, 7 }
 0x118   : > { %v4571_v49 = vpop.f32.mrf.mxu0  ;;  %v1460_v13 = vpack.c.bf16 %v4523_v32, %v1430_v63  ;;  %6281 = vst [vmem:[#allocation17_spill] sm:$0xff] %v4679_v4  ;;  %v4709_v47 = vmax.f32 %v601_v11, 0.0 }
 0x119   : > { %2344 = vrot.lane.b32.xlu0 %v4599_v38, %s3990_s14  ;;  %6273 = vst [vmem:[#allocation15_spill] sm:$0xff] %v4631_v15  ;;  %v4672_v46 = vsel %vm6220_vm3, %v6280_v18, %v6279_v45  ;;  %v1436_v45 = vsel %vm4591_vm14, %v4645_v55, 0.0  ;;  %v6282_v18 = vrot.slane %v4382_v19, 7 }
 0x11a   : > { %v4601_v51 = vpop.f32.mrf.mxu0  ;;  %6285 = vst [vmem:[#allocation18_spill] sm:$0xff] %v4709_v47 }
 0x11b   : > { %2150 = vrot.lane.b32.xlu1 %v1460_v13, %s3992_s21  ;;  %v1350_v13 = vpack.c.bf16 %v1323_v28, %v4544_v44  ;;  %v4653_v28 = vpack.c.bf16 %v4512_v52, %v4482_v53  ;;  %v4693_v44 = vsel %vm6220_vm3, %v6282_v18, %v745_v31  ;;  %v6283_v6 = vmov %v6282_v18 }
 0x11c   : > { %v4619_v63 = vpop.f32.mrf.mxu0  ;;  %v604_v31 = vadd.f32 %v4486_v21, %v4142_v23  ;;  %v6286_v18 = vrot.slane %v4565_v60, 1  ;;  %v1463_v21 = vpack.c.bf16 %v4672_v46, %v1436_v45  ;;  %v6290_v45 = vsel %vm4396_vm9, %v4263_v25, 0.0 }
 0x11d   : > { %2106 = vrot.lane.b32.xlu0 %v1350_v13, %s3987_s13  ;;  %v4748_v0 = vpack.c.bf16 %v4308_v42, %v6290_v45  ;;  %v596_v45 = vadd.f32 %v4142_v23, %v4502_v16  ;;  %v617_v16 = vadd.f32 %v4532_v37, %v4142_v23 }
 0x11e   : > { %v4638_v29 = vpop.f32.mrf.mxu0 }
 0x11f   : > { %2246 = vrot.lane.b32.xlu1 %v1588_v17, %s3991_s17  ;;  %v1738_v17 = vsel %vm4575_vm13, %v4645_v55, 0.0  ;;  %v593_v55 = vadd.f32 %v4142_v23, %v4466_v20  ;;  %6291 = vst [vmem:[#allocation19_spill] sm:$0xff] %v4748_v0  ;;  %v6311_v0 = vrot.slane %v4557_v2, 7 }
 0x120   : > { %v3759_v30 = vpop.f32.mrf.mxu0 }
 0x121   : > { %v636_v13 = vadd.f32 %v3759_v30, %v4142_v23  ;;  %v6284_v30 = vrot.slane %v4361_v7, 7  ;;  %2202 = vrot.lane.b32.xlu0 %v4599_v38, %s3989_s20  ;;  %v1766_v7 = vpack.c.bf16 %v4672_v46, %v1738_v17  ;;  %v4750_v11 = vmax.f32 %v593_v55, 0.0 }
 0x123   : > { %v4701_v8 = vsel %vm6220_vm3, %v6284_v30, %v6283_v6  ;;  %v4707_v9 = vmax.f32 %v636_v13, 0.0  ;;  %2104 = vrot.lane.b32.xlu1 %v1349_v40, %s3987_s13  ;;  %v6287_v6 = vrot.slane %v4512_v52, 1  ;;  %6292 = vst [vmem:[#allocation20_spill] sm:$0xff] %v4750_v11  ;;  %v6294_v13 = vrot.slane %v4538_v14, 1 }
 0x124   : > { %v1736_v40 = vsel %vm4400_vm10, %v4701_v8, 0.0 }
 0x125   : > { %v4723_v20 = vsel %vm1153_vm1, %v6287_v6, %v6286_v18  ;;  %v4733_v30 = vpack.c.bf16 %v4693_v44, %v1736_v40  ;;  %v6288_v15 = vmov %v6287_v6  ;;  %v6289_v18 = vrot.slane %v4482_v53, 1  ;;  %2060 = vrot.lane.b32.xlu0 %v4599_v38, %s3986_s9 }
 0x126   : > { %v1565_v40 = vsel %vm4626_vm15, %v4723_v20, 0.0  ;;  %v6296_v25 = vrot.slane %v4707_v9, 7  ;;  %v1434_v53 = vsel %vm4575_vm13, %v4701_v8, 0.0 }
 0x127   : > { %v4741_v6 = vsel %vm1153_vm1, %v6289_v18, %v6288_v15  ;;  %v6293_v17 = vmov %v6289_v18  ;;  %v4770_v18 = vmax.f32 %v604_v31, 0.0  ;;  %2346 = vrot.lane.b32.xlu1 %v4653_v28, %s3990_s14  ;;  %v6298_v31 = vrot.slane %v4538_v14, 1 }
 0x128   : > { %v4761_v15 = vsel %vm1153_vm1, %v6294_v13, %v6293_v17  ;;  %v800_v55 = vsel %vm6220_vm3, %v6296_v25, %v6295_v34  ;;  %v6299_v34 = vrot.slane %v4382_v19, 1  ;;  %v6300_v25 = vand.u32 15, %v4424_v58 }
 0x129   : > { %6297 = vst [vmem:[#allocation21_spill] sm:$0xff] %v4770_v18  ;;  %v963_v13 = vsel %vm4265_vm6, %v800_v55, 0.0  ;;  %v1563_v19 = vsel %vm4476_vm12, %v4761_v15, 0.0  ;;  %v1327_v14 = vsel %vm4657_vm2, %v4723_v20, 0.0  ;;  %v1325_v58 = vsel %vm4626_vm15, %v4761_v15, 0.0  ;;  %2298 = vrot.lane.b32.xlu0 %v1766_v7, %s3993_s16 }
 0x12a   : > { %v4790_v38 = vsel %vm1153_vm1, %v6299_v34, %v6298_v31  ;;  %vm4794_vm4 = vcmp.ge.s32.totalorder %v6300_v25, 1  ;;  %v4799_v26 = vpack.c.bf16 %v4205_v61, %v963_v13  ;;  %v6304_v31 = vand.u32 15, %v4427_v59 }
 0x12b   : > { %v6305_v13 = vmov 0  ;;  %v1591_v34 = vpack.c.bf16 %v1565_v40, %v4741_v6  ;;  %v1462_v25 = vpack.c.bf16 %v4693_v44, %v1434_v53  ;;  %v4823_v17 = vpack.c.bf16 %v4595_v62, %v4565_v60  ;;  %2204 = vrot.lane.b32.xlu1 %v4653_v28, %s3989_s20 }
 0x12c   : > { %6303 = vst [vmem:[#allocation22_spill] sm:$0xff] %v4799_v26  ;;  %vm4814_vm6 = vcmp.ge.s32.totalorder %v6304_v31, 1  ;;  %v609_v31 = vadd.f32 %v4142_v23, %v4553_v48  ;;  %v4833_v40 = vmax.f32 %v596_v45, 0.0  ;;  %v4836_v53 = vpack.c.bf16 %v1563_v19, %v4790_v38 }
 0x12d   : > { %v6306_v13 = vsel %vm4814_vm6, 4294967295, %v6305_v13  ;;  %v4839_v37 = vpack.c.bf16 %v1327_v14, %v4741_v6  ;;  %v4842_v26 = vpack.c.bf16 %v1325_v58, %v4790_v38  ;;  %v4844_v59 = vmax.f32 %v617_v16, 0.0  ;;  %2156 = vrot.lane.b32.xlu0 %v1463_v21, %s3992_s21 }
 0x12e   : > { %6307 = vst [vmem:[#allocation23_spill] sm:$0xff] %v6306_v13  ;;  %6308 = vst [vmem:[#allocation24_spill] sm:$0xff] %v4833_v40  ;;  %v620_v48 = vadd.f32 %v4571_v49, %v4142_v23  ;;  %v6310_v7 = vrot.slane %v4567_v33, 7  ;;  %v6312_v19 = vand.u32 15, %v4441_v5  ;;  %v967_v16 = vsel %vm4400_vm10, %v4508_v56, 0.0 }
 0x12f   : > { %6309 = vst [vmem:[#allocation25_spill] sm:$0xff] %v4844_v59  ;;  %v6315_v49 = vmov %v6311_v0  ;;  %v6316_v58 = vrot.slane %v4595_v62, 7  ;;  %v6318_v5 = vrot.slane %v4512_v52, 7  ;;  %v1426_v35 = vsel %vm4334_vm8, %v800_v55, 0.0  ;;  %2062 = vrot.lane.b32.xlu1 %v4653_v28, %s3986_s9 }
 0x130   : > { %v4854_v45 = vsel %vm6220_vm3, %v6311_v0, %v6310_v7  ;;  %vm4858_vm9 = vcmp.le.s32.totalorder %v6312_v19, 14  ;;  %v6317_v0 = vrot.slane %v4565_v60, 7  ;;  %v4882_v19 = vpack.c.bf16 %v4523_v32, %v967_v16 }
 0x131   : > { %v4871_v36 = vsel %vm6220_vm3, %v6316_v58, %v6315_v49  ;;  %v4886_v56 = vmax.f32 %v609_v31, 0.0  ;;  %v612_v49 = vadd.f32 %v4142_v23, %v4601_v51  ;;  %v4894_v52 = vpack.c.bf16 %v4205_v61, %v1426_v35  ;;  %2066 = vrot.lane.b32.xlu0 %v4676_v57, %s3986_s9 }
 0x132   : > { %v4879_v7 = vsel %vm6220_vm3, %v6318_v5, %v6317_v0  ;;  %6319 = vst [vmem:[#allocation26_spill] sm:$0xff] %v4882_v19  ;;  %v969_v32 = vsel %vm4575_vm13, %v4393_v27, 0.0  ;;  %v625_v55 = vadd.f32 %v4142_v23, %v4638_v29  ;;  %v6321_v31 = vmov %v6316_v58 }
 0x133   : > { %6320 = vst [vmem:[#allocation27_spill] sm:$0xff] %v4894_v52  ;;  %v6322_v51 = vmov %v6317_v0  ;;  %v4911_v61 = vpack.c.bf16 %v4450_v3, %v969_v32  ;;  %v4913_v28 = vmax.f32 %v620_v48, 0.0  ;;  %v633_v27 = vadd.f32 %v4619_v63, %v4142_v23  ;;  %2296 = vrot.lane.b32.xlu1 %v4733_v30, %s3993_s16 }
 0x134   : > { %v4908_v21 = vsel %vm6220_vm3, %v6322_v51, %v6321_v31  ;;  %v1742_v1 = vsel %vm4794_vm4, %v4871_v36, 0.0  ;;  %v1740_v29 = vsel %vm4591_vm14, %v4879_v7, 0.0  ;;  %v1440_v48 = vsel %vm4814_vm6, %v4871_v36, 0.0 }
 0x135   : > { %6323 = vst [vmem:[#allocation28_spill] sm:$0xff] %v4911_v61  ;;  %6324 = vst [vmem:[#allocation29_spill] sm:$0xff] %v4913_v28  ;;  %v4930_v0 = vmax.f32 %v612_v49, 0.0  ;;  %v1438_v5 = vsel %vm4794_vm4, %v4879_v7, 0.0  ;;  %v6326_v35 = vrot.slane %v4557_v2, 1  ;;  %v6327_v32 = vrot.slane %v4595_v62, 1  ;;  %2252 = vrot.lane.b32.xlu0 %v1591_v34, %s3991_s17 }
 0x136   : > { %v6329_v49 = vand.u32 15, %v4456_v43  ;;  %v6330_v51 = vmov 0  ;;  %v4954_v3 = vmax.f32 %v625_v55, 0.0  ;;  %v4957_v58 = vpack.c.bf16 %v4854_v45, %v1742_v1 }
 0x137   : > { %6325 = vst [vmem:[#allocation30_spill] sm:$0xff] %v4930_v0  ;;  %v4945_v31 = vsel %vm1153_vm1, %v6327_v32, %v6326_v35  ;;  %v4960_v63 = vpack.c.bf16 %v4908_v21, %v1740_v29  ;;  %v4963_v35 = vmax.f32 %v633_v27, 0.0  ;;  %v4966_v43 = vpack.c.bf16 %v4854_v45, %v1440_v48  ;;  %v627_v29 = vpop.f32.mrf.mxu0  ;;  %2154 = vrot.lane.b32.xlu1 %v1462_v25, %s3992_s21  ;;  %v6341_v48 = vld [vmem:[#allocation15_spill] sm:$0xff] }
 0x138   : > { %6328 = vst [vmem:[#allocation31_spill] sm:$0xff] %v4945_v31  ;;  %vm4949_vm8 = vcmp.ge.s32.totalorder %v6329_v49, 1  ;;  %v6333_v55 = vmov %v6327_v32  ;;  %v6334_v30 = vrot.slane %v4565_v60, 1  ;;  %v1567_v27 = vsel %vm4657_vm2, %v4945_v31, 0.0  ;;  %v6338_v60 = vld [vmem:[#allocation14_spill] sm:$0xff] }
 0x139   : > { %v6331_v51 = vsel %vm4949_vm8, 4294967295, %v6330_v51  ;;  %v1991_v16 = vsel %vm4299_vm7, %v6336_v50, 0.0  ;;  %v4988_v62 = vpack.c.bf16 %v4908_v21, %v1438_v5  ;;  %v6342_v25 = vrot.slane %v6341_v48, 1  ;;  %2348 = vrot.lane.b32.xlu0 %v4823_v17, %s3990_s14 }
 0x13a   : > { %6332 = vst [vmem:[#allocation32_spill] sm:$0xff] %v6331_v51  ;;  %v4976_v1 = vsel %vm1153_vm1, %v6334_v30, %v6333_v55  ;;  %v4992_v30 = vpack.c.bf16 %v4648_v39, %v6338_v60  ;;  %v6339_v55 = vld [vmem:[#allocation13_spill] sm:$0xff]  ;;  %v6343_v5 = vrot.slane %v4567_v33, 1  ;;  %v1993_v50 = vsel %vm4411_vm11, %v4761_v15, 0.0 }
 0x13b   : > { %6335 = vst [vmem:[#allocation33_spill] sm:$0xff] %v4976_v1  ;;  %v4995_v49 = vpack.c.bf16 %v1991_v16, %v6339_v55  ;;  %v5012_v16 = vpack.c.bf16 %v1567_v27, %v4976_v1  ;;  %v628_v55 = vadd.f32 %v4142_v23, %v627_v29  ;;  %v971_v23 = vsel %vm4591_vm14, %v4701_v8, 0.0  ;;  %2250 = vrot.lane.b32.xlu1 %v4836_v53, %s3991_s17 }
 0x13c   : > { %v5008_v32 = vsel %vm1153_vm1, %v6343_v5, %v6342_v25  ;;  %v6345_v34 = vmov %v6343_v5  ;;  %v692_v25 = vadd.s32 160, %v4144_v24  ;;  %v5028_v5 = vpack.c.bf16 %v1993_v50, %v4790_v38 }
 0x13d   : > { %6340 = vst [vmem:[#allocation12_spill] sm:$0xff] %v4995_v49  ;;  %v6346_v49 = vrot.slane %v4557_v2, 1  ;;  %v6348_v2 = vrot.slane %v4679_v4, 7  ;;  %v6349_v15 = vrot.slane %v6341_v48, 7  ;;  %v6351_v8 = vrot.slane %v4567_v33, 7  ;;  %2110 = vrot.lane.b32.xlu0 %v4839_v37, %s3987_s13 }
 0x13e   : > { %6347 = vst [vmem:[#allocation6_spill] sm:$0xff] %v5028_v5  ;;  %v5055_v27 = vpack.c.bf16 %v4693_v44, %v971_v23  ;;  %v6353_v53 = vrot.slane %v4954_v3, 7  ;;  %v6354_v29 = vrot.slane %v4913_v28, 7  ;;  %v6357_v44 = vld [vmem:[#allocation16_spill] sm:$0xff]  ;;  %v6361_v61 = vrot.slane %v4648_v39, 1 }
 0x13f   : > { %v5024_v52 = vsel %vm1153_vm1, %v6346_v49, %v6345_v34  ;;  %v5044_v38 = vsel %vm6220_vm3, %v6349_v15, %v6348_v2  ;;  %v6350_v49 = vmov %v6349_v15  ;;  %v6355_v34 = vrot.slane %v4648_v39, 7  ;;  %2108 = vrot.lane.b32.xlu1 %v4842_v26, %s3987_s13  ;;  %v6377_v5 = vld [vmem:[#allocation8_spill] sm:$0xff] }
 0x140   : > { %v5052_v12 = vsel %vm6220_vm3, %v6351_v8, %v6350_v49  ;;  %6352 = vst [vmem:[#allocation14_spill] sm:$0xff] %v5055_v27  ;;  %v5063_v50 = vsel %vm6220_vm3, %v6354_v29, %v6353_v53  ;;  %v6356_v2 = vrot.slane %v6338_v60, 7  ;;  %v694_v15 = vadd.s32 176, %v4144_v24 }
 0x141   : > { %v973_v23 = vsel %vm4794_vm4, %v6357_v44, 0.0  ;;  %v6359_v8 = vrot.slane %v4679_v4, 7  ;;  %v6360_v29 = vrot.slane %v4750_v11, 1  ;;  %v6364_v44 = vmov %v6361_v61  ;;  %2206 = vrot.lane.b32.xlu0 %v4823_v17, %s3989_s20 }
 0x142   : > { %v5071_v33 = vsel %vm6220_vm3, %v6356_v2, %v6355_v34  ;;  %v6358_v49 = vmov %v6356_v2  ;;  %v5093_v2 = vmax.f32 %v628_v55, 0.0  ;;  %v5096_v42 = vpack.c.bf16 %v4672_v46, %v973_v23 }
 0x143   : > { %v5083_v53 = vsel %vm6220_vm3, %v6359_v8, %v6358_v49  ;;  %v5091_v34 = vsel %vm1153_vm1, %v6361_v61, %v6360_v29  ;;  %v6365_v19 = vrot.slane %v6338_v60, 1  ;;  %v724_v8 = vand.u32 15, %v692_v25  ;;  %2350 = vrot.lane.b32.xlu1 %v4676_v57, %s3990_s14 }
 0x144   : > { %6362 = vst [vmem:[#allocation13_spill] sm:$0xff] %v5093_v2  ;;  %6363 = vst [vmem:[#allocation7_spill] sm:$0xff] %v5096_v42  ;;  %v695_v27 = vadd.s32 184, %v4144_v24  ;;  %v977_v61 = vsel %vm4949_vm8, %v4871_v36, 0.0  ;;  %v6369_v36 = vrot.slane %v6341_v48, 1  ;;  %v6371_v26 = vrot.slane %v4770_v18, 7 }
 0x145   : > { %v5104_v49 = vsel %vm1153_vm1, %v6365_v19, %v6364_v44  ;;  %v6366_v46 = vmov %v6365_v19  ;;  %v6367_v19 = vrot.slane %v4679_v4, 1  ;;  %v5132_v37 = vpack.c.bf16 %v4854_v45, %v977_v61  ;;  %2064 = vrot.lane.b32.xlu0 %v4823_v17, %s3986_s9 }
 0x146   : > { %v6372_v60 = vrot.slane %v4709_v47, 7  ;;  %v697_v45 = vadd.s32 200, %v4144_v24  ;;  %v696_v42 = vadd.s32 192, %v4144_v24  ;;  %vm5168_vm10 = vcmp.ge.s32.totalorder %v724_v8, 1 }
 0x147   : > { %v5121_v25 = vsel %vm1153_vm1, %v6367_v19, %v6366_v46  ;;  %v6368_v23 = vmov %v6367_v19  ;;  %6370 = vst [vmem:[#allocation16_spill] sm:$0xff] %v5132_v37  ;;  %v6374_v19 = vrot.slane %v4833_v40, 7  ;;  %v727_v61 = vand.u32 15, %v695_v27  ;;  %2208 = vrot.lane.b32.xlu1 %v4676_v57, %s3989_s20 }
 0x148   : > { %v5129_v29 = vsel %vm1153_vm1, %v6369_v36, %v6368_v23  ;;  %v5140_v44 = vsel %vm6220_vm3, %v6372_v60, %v6371_v26  ;;  %v6373_v46 = vmov %v6372_v60  ;;  %v726_v23 = vand.u32 15, %v694_v15 }
 0x149   : > { %v5148_v55 = vsel %vm6220_vm3, %v6374_v19, %v6373_v46  ;;  %v1150_v36 = vrot.slane %v5093_v2, 1  ;;  %v6375_v37 = vmov %v6374_v19  ;;  %v6376_v26 = vrot.slane %v4750_v11, 7  ;;  %2302 = vrot.lane.b32.xlu0 %v4957_v58, %s3993_s16 }
 0x14a   : > { %v6378_v46 = vand.u32 15, %v6377_v5  ;;  %v698_v51 = vadd.s32 208, %v4144_v24  ;;  %v699_v5 = vadd.s32 216, %v4144_v24  ;;  %v1997_v27 = vsel %vm4626_vm15, %v4945_v31, 0.0 }
 0x14b   : > { %v5159_v60 = vsel %vm6220_vm3, %v6376_v26, %v6375_v37  ;;  %v1995_v37 = vsel %vm4476_vm12, %v4723_v20, 0.0  ;;  %v975_v41 = vsel %vm4814_vm6, %v4879_v7, 0.0  ;;  %vm5190_vm11 = vcmp.ge.s32.totalorder %v726_v23, 1  ;;  %2300 = vrot.lane.b32.xlu1 %v4960_v63, %s3993_s16  ;;  %v6447_v63 = vld [vmem:[#allocation5_spill] sm:$0xff] }
 0x14c   : > { %vm5164_vm7 = vcmp.ge.s32.totalorder %v6378_v46, 1  ;;  %v5182_v8 = vpack.c.bf16 %v1995_v37, %v4741_v6  ;;  %v729_v26 = vand.u32 15, %v697_v45  ;;  %v5195_v46 = vpack.c.bf16 %v1997_v27, %v4976_v1  ;;  %v6388_v6 = vld [vmem:[#allocation9_spill] sm:$0xff] }
 0x14d   : > { %v5198_v4 = vpack.c.bf16 %v4908_v21, %v975_v41  ;;  %v6389_v37 = vand.u32 15, %v6388_v6  ;;  %v6393_v23 = vrot.slane %v4750_v11, 7  ;;  %v6394_v45 = vrot.slane %v4648_v39, 7  ;;  %v6395_v6 = vld [vmem:[#allocation11_spill] sm:$0xff]  ;;  %2160 = vrot.lane.b32.xlu0 %v4966_v43, %s3992_s21 }
 0x14e   : > { %6383 = vst [vmem:[#allocation8_spill] sm:$0xff] %v5182_v8  ;;  %6386 = vst [vmem:[#allocation34_spill] sm:$0xff] %v5195_v46  ;;  %v6392_v8 = vrot.slane %v4963_v35, 1  ;;  %v728_v27 = vand.u32 15, %v696_v42  ;;  %v700_v41 = vadd.s32 224, %v4144_v24  ;;  %v6402_v39 = vrot.slane %v4886_v56, 1 }
 0x14f   : > { %6387 = vst [vmem:[#allocation35_spill] sm:$0xff] %v5198_v4  ;;  %vm5202_vm12 = vcmp.le.s32.totalorder %v6389_v37, 14  ;;  %v5218_v21 = vsel %vm6220_vm3, %v6394_v45, %v6393_v23  ;;  %v6396_v37 = vand.u32 15, %v6395_v6  ;;  %v6403_v23 = vrot.slane %v4770_v18, 1  ;;  %2158 = vrot.lane.b32.xlu1 %v4988_v62, %s3992_s21 }
 0x150   : > { %v5210_v7 = vsel %vm1153_vm1, %v1150_v36, %v6392_v8  ;;  %v6399_v8 = vand.u32 15, %v4535_v10  ;;  %v6405_v6 = vrot.slane %v4709_v47, 1  ;;  %v730_v48 = vand.u32 15, %v698_v51 }
 0x151   : > { %vm5223_vm13 = vcmp.le.s32.totalorder %v6396_v37, 14  ;;  %v5239_v42 = vsel %vm1153_vm1, %v6403_v23, %v6402_v39  ;;  %v6404_v45 = vmov %v6403_v23  ;;  %vm5261_vm15 = vcmp.le.s32.totalorder %v727_v61, 14  ;;  %2354 = vrot.lane.b32.xlu0 %v4992_v30, %s3990_s14 }
 0x152   : > { %vm5229_vm14 = vcmp.le.s32.totalorder %v6399_v8, 14  ;;  %v5247_v37 = vsel %vm1153_vm1, %v6405_v6, %v6404_v45  ;;  %v6406_v10 = vmov %v6405_v6  ;;  %v6407_v8 = vrot.slane %v4833_v40, 1 }
 0x153   : > { %v6411_v45 = vrot.slane %v4750_v11, 1  ;;  %v6412_v51 = vrot.slane %v4930_v0, 7  ;;  %v6415_v61 = vrot.slane %v4770_v18, 7  ;;  %v731_v47 = vand.u32 15, %v699_v5  ;;  %v6424_v11 = vld [vmem:[#allocation10_spill] sm:$0xff]  ;;  %2254 = vrot.lane.b32.xlu1 %v5012_v16, %s3991_s17  ;;  %v6472_v16 = vld [vmem:[#allocation33_spill] sm:$0xff] }
 0x154   : > { %v5255_v13 = vsel %vm1153_vm1, %v6407_v8, %v6406_v10  ;;  %v6410_v23 = vmov %v6407_v8  ;;  %v6413_v10 = vrot.slane %v4886_v56, 7  ;;  %vm5289_vm4 = vcmp.le.s32.totalorder %v729_v26, 14 }
 0x155   : > { %v5271_v6 = vsel %vm1153_vm1, %v6411_v45, %v6410_v23  ;;  %v6418_v45 = vrot.slane %v4913_v28, 7  ;;  %v6419_v40 = vrot.slane %v4844_v59, 7  ;;  %v6421_v18 = vrot.slane %v4930_v0, 7  ;;  %2212 = vrot.lane.b32.xlu0 %v4992_v30, %s3989_s20 }
 0x156   : > { %v5279_v17 = vsel %vm6220_vm3, %v6413_v10, %v6412_v51  ;;  %v6414_v57 = vmov %v6413_v10  ;;  %v6422_v5 = vrot.slane %v4844_v59, 1  ;;  %v6423_v26 = vrot.slane %v4930_v0, 1 }
 0x157   : > { %v5287_v8 = vsel %vm6220_vm3, %v6415_v61, %v6414_v57  ;;  %v5299_v51 = vsel %vm6220_vm3, %v6419_v40, %v6418_v45  ;;  %v6420_v10 = vmov %v6419_v40  ;;  %v6425_v31 = vand.u32 15, %v6424_v11 }
 0x158   : > { %v5307_v57 = vsel %vm6220_vm3, %v6421_v18, %v6420_v10  ;;  %v5315_v61 = vsel %vm1153_vm1, %v6423_v26, %v6422_v5  ;;  %v6426_v40 = vmov 0  ;;  %v702_v45 = vadd.s32 240, %v4144_v24 }
 0x159   : > { %vm5319_vm0 = vcmp.le.s32.totalorder %v6425_v31, 14  ;;  %vm5324_vm5 = vcmp.ge.s32.totalorder %v728_v27, 1  ;;  %v6431_v18 = vmov %v6423_v26  ;;  %v6432_v10 = vrot.slane %v4886_v56, 1  ;;  %2070 = vrot.lane.b32.xlu0 %v4992_v30, %s3986_s9 }
 0x15a   : > { %v6427_v40 = vsel %vm5319_vm0, 4294967295, %v6426_v40  ;;  %v732_v26 = vand.u32 15, %v700_v41  ;;  %v1999_v11 = vsel %vm4657_vm2, %v5008_v32, 0.0  ;;  %vm5339_vm3 = vcmp.ge.s32.totalorder %v730_v48, 1 }
 0x15b   : > { %6428 = vst [vmem:[#allocation9_spill] sm:$0xff] %v6427_v40  ;;  %v5334_v5 = vsel %vm1153_vm1, %v6432_v10, %v6431_v18  ;;  %v6435_v27 = vrot.slane %v4954_v3, 1  ;;  %v6436_v40 = vrot.slane %v4913_v28, 1  ;;  %v6438_v41 = vrot.slane %v4844_v59, 1 }
 0x15c   : > { %v734_v48 = vand.u32 15, %v702_v45  ;;  %vm5363_vm2 = vcmp.le.s32.totalorder %v731_v47, 14  ;;  %vm6443_vm8 = vcmp.lt.s32.totalorder %v4144_v24, 1  ;;  %v6444_v45 = vrot.slane %v4707_v9, 1 }
 0x15d   : > { %v5349_v0 = vsel %vm1153_vm1, %v6436_v40, %v6435_v27  ;;  %v6437_v18 = vmov %v6436_v40  ;;  %v6441_v40 = vrot.slane %v5093_v2, 7  ;;  %v6442_v27 = vrot.slane %v4954_v3, 7 }
 0x15e   : > { %v5357_v54 = vsel %vm1153_vm1, %v6438_v41, %v6437_v18  ;;  %v6445_v18 = vrot.slane %v4963_v35, 1  ;;  %v5384_v47 = vpack.c.bf16 %v1999_v11, %v5024_v52  ;;  %v6448_v41 = vrot.slane %v6447_v63, 1 }
 0x15f   : > { %v5373_v28 = vsel %vm6443_vm8, %v6442_v27, %v6441_v40  ;;  %v6449_v2 = vmov %v6444_v45  ;;  %v6450_v40 = vrot.slane %v4954_v3, 1  ;;  %v981_v11 = vsel %vm5168_vm10, %v5083_v53, 0.0 }
 0x160   : > { %v5381_v58 = vsel %vm1153_vm1, %v6445_v18, %v6444_v45  ;;  %6446 = vst [vmem:[#allocation11_spill] sm:$0xff] %v5384_v47  ;;  %v5392_v59 = vsel %vm1153_vm1, %v6449_v2, %v6448_v41  ;;  %v2001_v45 = vsel %vm4858_vm9, %v5121_v25, 0.0  ;;  %vm5406_vm8 = vcmp.ge.s32.totalorder %v732_v26, 1  ;;  %v6477_v47 = vld [vmem:[#allocation17_spill] sm:$0xff]  ;;  %v6524_v41 = vld [vmem:[#allocation7_spill] sm:$0xff] }
 0x161   : > { %v5398_v27 = vsel %vm1153_vm1, %v6450_v40, %v1150_v36  ;;  %v5411_v2 = vpack.c.bf16 %v2001_v45, %v5129_v29  ;;  %v5414_v63 = vpack.c.bf16 %v5071_v33, %v981_v11  ;;  %v979_v36 = vsel %vm5164_vm7, %v5052_v12, 0.0 }
 0x162   : > { %6451 = vst [vmem:[#allocation10_spill] sm:$0xff] %v5398_v27  ;;  %vm5419_vm1 = vcmp.ge.s32.totalorder %v734_v48, 1  ;;  %v5424_v40 = vpack.c.bf16 %v5044_v38, %v979_v36  ;;  %v2003_v26 = vsel %vm5202_vm12, %v5091_v34, 0.0  ;;  %v983_v45 = vsel %vm5190_vm11, %v5218_v21, 0.0 }
 0x163   : > { %6454 = vst [vmem:[#allocation5_spill] sm:$0xff] %v5411_v2  ;;  %6455 = vst [vmem:[#allocation36_spill] sm:$0xff] %v5414_v63  ;;  %v5437_v48 = vpack.c.bf16 %v2003_v26, %v5104_v49  ;;  %v5440_v11 = vpack.c.bf16 %v5159_v60, %v983_v45  ;;  %v2005_v36 = vsel %vm5223_vm13, %v5255_v13, 0.0  ;;  %v2007_v63 = vsel %vm5229_vm14, %v5239_v42, 0.0  ;;  %v6476_v2 = vld [vmem:[#allocation15_spill] sm:$0xff] }
 0x164   : > { %6458 = vst [vmem:[#allocation37_spill] sm:$0xff] %v5424_v40  ;;  %v5449_v40 = vpack.c.bf16 %v2005_v36, %v5271_v6  ;;  %v5452_v43 = vpack.c.bf16 %v2007_v63, %v5247_v37  ;;  %v2009_v62 = vsel %vm5261_vm15, %v5315_v61, 0.0  ;;  %v985_v26 = vsel %vm5324_vm5, %v5148_v55, 0.0 }
 0x165   : > { %6459 = vst [vmem:[#allocation38_spill] sm:$0xff] %v5437_v48  ;;  %6460 = vst [vmem:[#allocation39_spill] sm:$0xff] %v5440_v11  ;;  %v5461_v45 = vpack.c.bf16 %v2009_v62, %v5334_v5  ;;  %v5464_v11 = vpack.c.bf16 %v5140_v44, %v985_v26  ;;  %v2011_v36 = vsel %vm5289_vm4, %v5349_v0, 0.0  ;;  %v987_v63 = vsel %vm5339_vm3, %v5287_v8, 0.0 }
 0x166   : > { %6461 = vst [vmem:[#allocation40_spill] sm:$0xff] %v5449_v40  ;;  %6462 = vst [vmem:[#allocation41_spill] sm:$0xff] %v5452_v43  ;;  %v5473_v43 = vpack.c.bf16 %v2011_v36, %v5357_v54  ;;  %v5476_v40 = vpack.c.bf16 %v5279_v17, %v987_v63  ;;  %v2013_v62 = vsel %vm5363_vm2, %v5210_v7, 0.0  ;;  %v989_v26 = vsel %vm5406_vm8, %v5307_v57, 0.0 }
 0x167   : > { %6463 = vst [vmem:[#allocation42_spill] sm:$0xff] %v5461_v45  ;;  %6464 = vst [vmem:[#allocation43_spill] sm:$0xff] %v5464_v11  ;;  %v5489_v36 = vpack.c.bf16 %v2013_v62, %v5398_v27  ;;  %v5492_v63 = vpack.c.bf16 %v5299_v51, %v989_v26  ;;  %v2015_v11 = vsel %vm5319_vm0, %v5392_v59, 0.0  ;;  %v6473_v62 = vld [vmem:[#allocation31_spill] sm:$0xff]  ;;  %v1444_v14 = vsel %vm5164_vm7, %v5083_v53, 0.0  ;;  %v6482_v27 = vld [vmem:[#allocation32_spill] sm:$0xff] }
 0x168   : > { %6465 = vst [vmem:[#allocation44_spill] sm:$0xff] %v5473_v43  ;;  %6466 = vst [vmem:[#allocation45_spill] sm:$0xff] %v5476_v40  ;;  %v991_v40 = vsel %vm5419_vm1, %v5063_v50, 0.0  ;;  %v5504_v48 = vpack.c.bf16 %v2015_v11, %v5381_v58  ;;  %v6474_v26 = vsel %vm4858_vm9, %v6473_v62, 0.0  ;;  %v1569_v11 = vsel %vm4858_vm9, %v5008_v32, 0.0 }
 0x169   : > { %6467 = vst [vmem:[#allocation46_spill] sm:$0xff] %v5489_v36  ;;  %6468 = vst [vmem:[#allocation47_spill] sm:$0xff] %v5492_v63  ;;  %v5501_v45 = vpack.c.bf16 %v5373_v28, %v991_v40  ;;  %v1353_v63 = vpack.c.bf16 %v6474_v26, %v6472_v16  ;;  %v5511_v36 = vpop.permute.xlu1 %2050  ;;  %v1114_v40 = vpack.c.bf16 %v6477_v47, %v6476_v2  ;;  %v1331_v2 = vsel %vm5202_vm12, %v5008_v32, 0.0  ;;  %v6480_v32 = vld [vmem:[#allocation20_spill] sm:$0xff] }
 0x16a   : > { %6471 = vst [vmem:[#allocation48_spill] sm:$0xff] %v5504_v48  ;;  %6475 = vst [vmem:[#allocation33_spill] sm:$0xff] %v5511_v36  ;;  %v1744_v48 = vsel %vm4814_vm6, %v5052_v12, 0.0  ;;  %v1467_v30 = vpack.c.bf16 %v5071_v33, %v1444_v14  ;;  %vm6483_vm6 = vnez %v6482_v27  ;;  %v1448_v4 = vsel %vm5190_vm11, %v5148_v55, 0.0 }
 0x16b   : > { %6470 = vst [vmem:[#allocation9_spill] sm:$0xff] %v5501_v45  ;;  %2112 = vrot.lane.b32.xlu1 %v1353_v63, %s3987_s13  ;;  %v1593_v63 = vpack.c.bf16 %v1569_v11, %v5024_v52  ;;  %v1769_v62 = vpack.c.bf16 %v5044_v38, %v1744_v48  ;;  %v1573_v48 = vsel %vm5223_vm13, %v5091_v34, 0.0  ;;  %v2053_v45 = vpop.permute.xlu0 %2052  ;;  %v1354_v11 = vpack.c.bf16 %v1331_v2, %v5024_v52 }
 0x16c   : > { %v1335_v52 = vsel %vm5229_vm14, %v5091_v34, 0.0  ;;  %vm6232_vm9 = vcmask 392192   ;;  %v1575_v19 = vsel %vm5229_vm14, %v5255_v13, 0.0 }
 0x16d   : > { %v5527_v16 = vpop.permute.xlu1 %2098  ;;  %2256 = vrot.lane.b32.xlu0 %v1593_v63, %s3991_s17  ;;  %v1595_v63 = vpack.c.bf16 %v1573_v48, %v5104_v49 }
 0x16e   : > { %6479 = vst [vmem:[#allocation31_spill] sm:$0xff] %v5527_v16 }
 0x16f   : > { %2068 = vrot.lane.b32.xlu1 %v1114_v40, %s3986_s9  ;;  %v2101_v16 = vpop.permute.xlu0 %2100 }
 0x171   : > { %v5536_v47 = vpop.permute.xlu1 %2196  ;;  %2352 = vrot.lane.b32.xlu0 %v1114_v40, %s3990_s14 }
 0x173   : > { %2304 = vrot.lane.b32.xlu1 %v1769_v62, %s3993_s16  ;;  %v6481_v62 = vld [vmem:[#allocation24_spill] sm:$0xff]  ;;  %v2245_v2 = vpop.permute.xlu0 %2244 }
 0x174   : > { %v1116_v14 = vpack.c.bf16 %v6481_v62, %v6480_v32  ;;  %v1571_v32 = vsel %vm5202_vm12, %v5121_v25, 0.0  ;;  %v1746_v62 = vsel %vm6483_vm6, %v5083_v53, 0.0  ;;  %vm2419_vm12 = vcmask 261120  }
 0x175   : > { %v5547_v26 = vpop.permute.xlu1 %2054  ;;  %2114 = vrot.lane.b32.xlu0 %v1354_v11, %s3987_s13  ;;  %v1770_v22 = vpack.c.bf16 %v5071_v33, %v1746_v62  ;;  %v1469_v62 = vpack.c.bf16 %v5140_v44, %v1448_v4 }
 0x177   : > { %2164 = vrot.lane.b32.xlu1 %v1467_v30, %s3992_s21  ;;  %v1442_v30 = vsel %vm6483_vm6, %v5052_v12, 0.0  ;;  %v2341_v12 = vpop.permute.xlu0 %2340  ;;  %vm2517_vm6 = vcmask 654336  }
 0x178   : > { %v1466_v11 = vpack.c.bf16 %v5044_v38, %v1442_v30  ;;  %v1333_v30 = vsel %vm5223_vm13, %v5121_v25, 0.0  ;;  %vm6487_vm13 = vcmask 130048  }
 0x179   : > { %v5555_v36 = vpop.permute.xlu1 %2338  ;;  %2210 = vrot.lane.b32.xlu0 %v1114_v40, %s3989_s20  ;;  %v1594_v40 = vpack.c.bf16 %v1571_v32, %v5129_v29  ;;  %v6484_v32 = vld [vmem:[#allocation18_spill] sm:$0xff] }
 0x17b   : > { %2260 = vrot.lane.b32.xlu1 %v1595_v63, %s3991_s17  ;;  %v1356_v63 = vpack.c.bf16 %v1335_v52, %v5104_v49  ;;  %v2103_v38 = vpop.permute.xlu0 %2102  ;;  %v1750_v52 = vsel %vm5168_vm10, %v5148_v55, 0.0  ;;  %v6486_v55 = vld [vmem:[#allocation22_spill] sm:$0xff] }
 0x17d   : > { %v5565_v48 = vpop.permute.xlu1 %2194  ;;  %2162 = vrot.lane.b32.xlu0 %v1466_v11, %s3992_s21  ;;  %v1355_v11 = vpack.c.bf16 %v1333_v30, %v5129_v29  ;;  %v2376_v29 = vsel %vm6487_vm13, %v6486_v55, %v2053_v45  ;;  %v6488_v45 = vld [vmem:[#allocation27_spill] sm:$0xff]  ;;  %vm2550_vm13 = vcmask 785408  }
 0x17f   : > { %2356 = vrot.lane.b32.xlu1 %v1116_v14, %s3990_s14  ;;  %v2199_v53 = vpop.permute.xlu0 %2198 }
 0x181   : > { %v2149_v34 = vpop.permute.xlu1 %2148  ;;  %2258 = vrot.lane.b32.xlu0 %v1594_v40, %s3991_s17 }
 0x183   : > { %2118 = vrot.lane.b32.xlu1 %v1356_v63, %s3987_s13  ;;  %v1772_v63 = vpack.c.bf16 %v5140_v44, %v1750_v52  ;;  %v5600_v33 = vpop.permute.xlu0 %2056  ;;  %v2423_v52 = vsel %vm2419_vm12, %v2376_v29, %v2101_v16  ;;  %v1577_v44 = vsel %vm5261_vm15, %v5239_v42, 0.0 }
 0x184   : > { %v1597_v15 = vpack.c.bf16 %v1577_v44, %v5247_v37 }
 0x185   : > { %v5580_v49 = vpop.permute.xlu1 %2242  ;;  %2306 = vrot.lane.b32.xlu0 %v1770_v22, %s3993_s16 }
 0x187   : > { %2214 = vrot.lane.b32.xlu1 %v1116_v14, %s3989_s20  ;;  %v2295_v22 = vpop.permute.xlu0 %2294 }
 0x189   : > { %v5591_v27 = vpop.permute.xlu1 %2290  ;;  %2116 = vrot.lane.b32.xlu0 %v1355_v11, %s3987_s13  ;;  %v1748_v11 = vsel %vm5164_vm7, %v5218_v21, 0.0  ;;  %vm6489_vm7 = vcmask 523264  }
 0x18a   : > { %v1771_v16 = vpack.c.bf16 %v5159_v60, %v1748_v11 }
 0x18b   : > { %2072 = vrot.lane.b32.xlu1 %v1116_v14, %s3986_s9  ;;  %v6485_v14 = vld [vmem:[#allocation21_spill] sm:$0xff]  ;;  %v5626_v4 = vpop.permute.xlu0 %2152 }
 0x18c   : > { %v5604_v40 = vpack.c.bf16 %v6485_v14, %v6484_v32 }
 0x18d   : > { %v2343_v25 = vpop.permute.xlu1 %2342 }
 0x18e   : > { %2358 = vrot.lane.b32.xlu0 %v5604_v40, %s3990_s14 }
 0x18f   : > { %2310 = vrot.lane.b32.xlu1 %v1772_v63, %s3993_s16  ;;  %v2456_v63 = vsel %vm6232_vm9, %v2423_v52, %v2149_v34  ;;  %v1446_v34 = vsel %vm5168_vm10, %v5218_v21, 0.0  ;;  %vm2583_vm9 = vcmask 916480   ;;  %v1339_v21 = vsel %vm5289_vm4, %v5239_v42, 0.0 }
 0x190   : > { %v2488_v14 = vsel %vm6489_vm7, %v2456_v63, %v5536_v47  ;;  %v1468_v52 = vpack.c.bf16 %v5159_v60, %v1446_v34  ;;  %v6490_v47 = vld [vmem:[#allocation30_spill] sm:$0xff]  ;;  %v6491_v60 = vld [vmem:[#allocation19_spill] sm:$0xff]  ;;  %vm6492_vm10 = vcmask 130048   ;;  %v1358_v42 = vpack.c.bf16 %v1339_v21, %v5247_v37 }
 0x191   : > { %v5612_v30 = vpop.permute.xlu1 %2200  ;;  %v2521_v29 = vsel %vm2517_vm6, %v2488_v14, %v2245_v2  ;;  %v1118_v11 = vpack.c.bf16 %v6490_v47, %v4886_v56  ;;  %v2379_v56 = vsel %vm6492_vm10, %v6491_v60, %v5547_v26  ;;  %vm6494_vm14 = vmmov %vm6492_vm10  ;;  %vm6495_vm7 = vcmask 392192  }
 0x192   : > { %2216 = vrot.lane.b32.xlu0 %v5604_v40, %s3989_s20  ;;  %v2425_v63 = vsel %vm2419_vm12, %v2379_v56, %v2103_v38  ;;  %vm6496_vm10 = vcmask 523264   ;;  %v1752_v37 = vsel %vm5190_vm11, %v5287_v8, 0.0  ;;  %vm6498_vm11 = vmmov %vm6494_vm14 }
 0x193   : > { %2168 = vrot.lane.b32.xlu1 %v1469_v62, %s3992_s21  ;;  %v5639_v62 = vpop.permute.xlu0 %2248  ;;  %v1773_v47 = vpack.c.bf16 %v5279_v17, %v1752_v37  ;;  %v1343_v37 = vsel %vm5319_vm0, %v5349_v0, 0.0 }
 0x195   : > { %v5628_v32 = vpop.permute.xlu1 %2058 }
 0x196   : > { %2308 = vrot.lane.b32.xlu0 %v1771_v16, %s3993_s16  ;;  %v1596_v16 = vpack.c.bf16 %v1575_v19, %v5271_v6 }
 0x197   : > { %2146 = vrot.lane.b32.xlu1 %v6488_v45, %s3992_s21  ;;  %v5659_v45 = vpop.permute.xlu0 %2344 }
 0x199   : > { %v2293_v55 = vpop.permute.xlu1 %2292 }
 0x19a   : > { %v2554_v44 = vsel %vm2550_vm13, %v2521_v29, %v2293_v55  ;;  %2166 = vrot.lane.b32.xlu0 %v1468_v52, %s3992_s21 }
 0x19b   : > { %2264 = vrot.lane.b32.xlu1 %v1597_v15, %s3991_s17  ;;  %v2588_v2 = vsel %vm2583_vm9, %v2554_v44, %v2341_v12  ;;  %v6493_v15 = vld [vmem:[#allocation12_spill] sm:$0xff]  ;;  %v1337_v12 = vsel %vm5261_vm15, %v5255_v13, 0.0  ;;  %v2107_v26 = vpop.permute.xlu0 %2106  ;;  %v1754_v13 = vsel %vm5324_vm5, %v5307_v57, 0.0  ;;  %v6497_v44 = vld [vmem:[#allocation6_spill] sm:$0xff]  ;;  %vm6500_vm15 = vmmov %vm6498_vm11 }
 0x19c   : > { %2800 = vmatmul.mubr.bf16.vlgmr.msra.gmra.mxu1 %v2588_v2  ;;  %v1357_v55 = vpack.c.bf16 %v1337_v12, %v5271_v6  ;;  %v1774_v20 = vpack.c.bf16 %v5299_v51, %v1754_v13  ;;  %v6499_v2 = vld [vmem:[#allocation26_spill] sm:$0xff]  ;;  %v6504_v12 = vld [vmem:[#allocation29_spill] sm:$0xff]  ;;  %v6506_v13 = vld [vmem:[#allocation28_spill] sm:$0xff] }
 0x19d   : > { %v2151_v46 = vpop.permute.xlu1 %2150  ;;  %3581 = vmatprep.mubr.msk.bf16.mxu1 %vm6494_vm14, %v6493_v15  ;;  %v2382_v60 = vsel %vm6500_vm15, %v6499_v2, %v5600_v33  ;;  %v1581_v33 = vsel %vm5363_vm2, %v5349_v0, 0.0  ;;  %vm6507_vm14 = vmmov %vm6498_vm11  ;;  %v1360_v0 = vpack.c.bf16 %v1343_v37, %v5357_v54 }
 0x19e   : > { %v2458_v14 = vsel %vm6495_vm7, %v2425_v63, %v2151_v46  ;;  %2262 = vrot.lane.b32.xlu0 %v1596_v16, %s3991_s17 }
 0x19f   : > { %2360 = vrot.lane.b32.xlu1 %v1118_v11, %s3990_s14  ;;  %v2490_v34 = vsel %vm6496_vm10, %v2458_v14, %v2199_v53  ;;  %v2203_v52 = vpop.permute.xlu0 %2202  ;;  %v6503_v14 = vld [vmem:[#allocation25_spill] sm:$0xff] }
 0x1a1   : > { %v2247_v38 = vpop.permute.xlu1 %2246 }
 0x1a2   : > { %v2523_v29 = vsel %vm2517_vm6, %v2490_v34, %v2247_v38  ;;  %2120 = vrot.lane.b32.xlu0 %v1357_v55, %s3987_s13  ;;  %v1119_v38 = vpack.c.bf16 %v6504_v12, %v6503_v14  ;;  %v6505_v34 = vld [vmem:[#allocation13_spill] sm:$0xff] }
 0x1a3   : > { %2122 = vrot.lane.b32.xlu1 %v1358_v42, %s3987_s13  ;;  %v2556_v39 = vsel %vm2550_vm13, %v2523_v29, %v2295_v22  ;;  %v5690_v19 = vpop.permute.xlu0 %2060  ;;  %v1452_v22 = vsel %vm5339_vm3, %v5307_v57, 0.0  ;;  %v1579_v57 = vsel %vm5289_vm4, %v5315_v61, 0.0  ;;  %vm6502_vm4 = vmmov %vm6496_vm10  ;;  %v1120_v55 = vpack.c.bf16 %v6505_v34, %v4954_v3 }
 0x1a4   : > { %v2591_v53 = vsel %vm2583_vm9, %v2556_v39, %v2343_v25  ;;  %v1450_v25 = vsel %vm5324_vm5, %v5287_v8, 0.0  ;;  %v1471_v8 = vpack.c.bf16 %v5299_v51, %v1452_v22  ;;  %vm6501_vm5 = vmmov %vm6495_vm7  ;;  %v1599_v51 = vpack.c.bf16 %v1581_v33, %v5357_v54  ;;  %v6518_v33 = vld [vmem:[#allocation14_spill] sm:$0xff] }
 0x1a5   : > { %v2105_v6 = vpop.permute.xlu1 %2104  ;;  %2808 = vmatmul.mubr.bf16.gmra.mxu1 %v2591_v53  ;;  %v1470_v1 = vpack.c.bf16 %v5279_v17, %v1450_v25  ;;  %v1598_v17 = vpack.c.bf16 %v1579_v57, %v5334_v5  ;;  %v2385_v3 = vsel %vm6507_vm14, %v6506_v13, %v5628_v32  ;;  %vm6510_vm7 = vmmov %vm6501_vm5  ;;  %v703_v32 = vadd.s32 248, %v4144_v24 }
 0x1a6   : > { %3582 = vmatprep.mubr.msk.bf16.mxu1 %vm6498_vm11, %v6497_v44  ;;  %2312 = vrot.lane.b32.xlu0 %v1773_v47, %s3993_s16  ;;  %v2427_v56 = vsel %vm2419_vm12, %v2382_v60, %v2105_v6  ;;  %v2429_v39 = vsel %vm2419_vm12, %v2385_v3, %v2107_v26  ;;  %v6508_v6 = vld [vmem:[#allocation8_spill] sm:$0xff]  ;;  %vm6511_vm10 = vmmov %vm6502_vm4  ;;  %v6512_v25 = vrot.slane %v6505_v34, 7  ;;  %v1454_v34 = vsel %vm5406_vm8, %v5063_v50, 0.0  ;;  %v6526_v3 = vld [vmem:[#allocation10_spill] sm:$0xff] }
 0x1a7   : > { %2218 = vrot.lane.b32.xlu1 %v1118_v11, %s3989_s20  ;;  %v2299_v63 = vpop.permute.xlu0 %2298  ;;  %v735_v2 = vand.u32 15, %v703_v32 }
 0x1a9   : > { %v2347_v21 = vpop.permute.xlu1 %2346  ;;  %vm5782_vm14 = vcmp.le.s32.totalorder %v735_v2, 14 }
 0x1aa   : > { %2074 = vrot.lane.b32.xlu0 %v5604_v40, %s3986_s9  ;;  %v2460_v40 = vsel %vm6501_vm5, %v2427_v56, %v5626_v4 }
 0x1ab   : > { %2314 = vrot.lane.b32.xlu1 %v1774_v20, %s3993_s16  ;;  %v2492_v23 = vsel %vm6502_vm4, %v2460_v40, %v5612_v30  ;;  %v1341_v30 = vsel %vm5363_vm2, %v5315_v61, 0.0  ;;  %vm6509_vm2 = vmmov %vm6498_vm11  ;;  %vm6513_vm11 = vcmp.lt.s32.totalorder %v4144_v24, 1  ;;  %v1489_v24 = vpack.c.bf16 %v4707_v9, %v4963_v35 }
 0x1ac   : > { %v2525_v42 = vsel %vm2517_vm6, %v2492_v23, %v5639_v62  ;;  %v1359_v53 = vpack.c.bf16 %v1341_v30, %v5334_v5  ;;  %vm6515_vm15 = vmmov %vm6509_vm2 }
 0x1ad   : > { %v5705_v46 = vpop.permute.xlu1 %2204  ;;  %vm6517_vm5 = vmmov %vm6513_vm11 }
 0x1ae   : > { %2170 = vrot.lane.b32.xlu0 %v1470_v1, %s3992_s21  ;;  %vm6519_vm4 = vmmov %vm6509_vm2 }
 0x1af   : > { %2076 = vrot.lane.b32.xlu1 %v1118_v11, %s3986_s9  ;;  %v2157_v11 = vpop.permute.xlu0 %2156  ;;  %v2388_v40 = vsel %vm6519_vm4, %v6518_v33, %v5690_v19  ;;  %v1756_v19 = vsel %vm5339_vm3, %v5063_v50, 0.0  ;;  %v1583_v50 = vsel %vm5319_vm0, %v5210_v7, 0.0  ;;  %vm6525_vm3 = vmmov %vm6519_vm4 }
 0x1b0   : > { %vm6539_vm4 = vmmov %vm6525_vm3 }
 0x1b1   : > { %v5719_v16 = vpop.permute.xlu1 %2062 }
 0x1b2   : > { %2266 = vrot.lane.b32.xlu0 %v1598_v17, %s3991_s17  ;;  %v2391_v37 = vsel %vm6525_vm3, %v6524_v41, %v5719_v16 }
 0x1b3   : > { %2172 = vrot.lane.b32.xlu1 %v1471_v8, %s3992_s21  ;;  %v5727_v15 = vpop.permute.xlu0 %2066  ;;  %v6516_v8 = vrot.slane %v4707_v9, 7  ;;  %v1775_v9 = vpack.c.bf16 %v5373_v28, %v1756_v19 }
 0x1b5   : > { %v2297_v4 = vpop.permute.xlu1 %2296 }
 0x1b6   : > { %v2558_v29 = vsel %vm2550_vm13, %v2525_v42, %v2297_v4  ;;  %2362 = vrot.lane.b32.xlu0 %v1119_v38, %s3990_s14  ;;  %v1585_v42 = vsel %vm5782_vm14, %v5392_v59, 0.0 }
 0x1b7   : > { %2268 = vrot.lane.b32.xlu1 %v1599_v51, %s3991_s17  ;;  %v2594_v62 = vsel %vm2583_vm9, %v2558_v29, %v5659_v45  ;;  %v2253_v10 = vpop.permute.xlu0 %2252  ;;  %v766_v45 = vrot.slane %v4963_v35, 7  ;;  %v1601_v35 = vpack.c.bf16 %v1585_v42, %v5381_v58  ;;  %v1472_v58 = vpack.c.bf16 %v5373_v28, %v1454_v34  ;;  %v6540_v42 = vld [vmem:[#allocation16_spill] sm:$0xff] }
 0x1b8   : > { %2816 = vmatmul.mubr.bf16.gmra.mxu1 %v2594_v62 }
 0x1b9   : > { %v2155_v61 = vpop.permute.xlu1 %2154  ;;  %3583 = vmatprep.mubr.msk.bf16.mxu1 %vm6509_vm2, %v6508_v6  ;;  %v770_v22 = vsel %vm6513_vm11, %v6512_v25, %v766_v45  ;;  %v769_v57 = vsel %vm6517_vm5, %v766_v45, %v6516_v8  ;;  %vm6522_vm2 = vmmov %vm6510_vm7  ;;  %v6534_v25 = vld [vmem:[#allocation5_spill] sm:$0xff] }
 0x1ba   : > { %v2462_v47 = vsel %vm6510_vm7, %v2429_v39, %v2155_v61  ;;  %2124 = vrot.lane.b32.xlu0 %v1359_v53, %s3987_s13  ;;  %vm6523_vm7 = vmmov %vm6511_vm10  ;;  %v1456_v59 = vsel %vm5419_vm1, %v770_v22, 0.0  ;;  %v1600_v39 = vpack.c.bf16 %v1583_v50, %v6526_v3  ;;  %v6530_v61 = vmov 0.0|0.0  }
 0x1bb   : > { %2364 = vrot.lane.b32.xlu1 %v1120_v55, %s3990_s14  ;;  %v2349_v26 = vpop.permute.xlu0 %2348  ;;  %v2494_v44 = vsel %vm6511_vm10, %v2462_v47, %v2203_v52  ;;  %v6514_v52 = vld [vmem:[#allocation34_spill] sm:$0xff]  ;;  %v1473_v30 = vpack.c.bf16 %v769_v57, %v1456_v59  ;;  %vm6529_vm0 = vmmov %vm6522_vm2  ;;  %v1345_v47 = vsel %vm5782_vm14, %v5210_v7, 0.0 }
 0x1bc   : > { %vm6531_vm1 = vmmov %vm6523_vm7 }
 0x1bd   : > { %v2251_v20 = vpop.permute.xlu1 %2250  ;;  %vm6533_vm10 = vmmov %vm6525_vm3 }
 0x1be   : > { %v2527_v5 = vsel %vm2517_vm6, %v2494_v44, %v2251_v20  ;;  %2220 = vrot.lane.b32.xlu0 %v1119_v38, %s3989_s20  ;;  %v1361_v44 = vpack.c.bf16 %v1345_v47, %v6526_v3  ;;  %vm6535_vm11 = vmmov %vm6525_vm3  ;;  %v6550_v3 = vld [vmem:[#allocation31_spill] sm:$0xff] }
 0x1bf   : > { %2126 = vrot.lane.b32.xlu1 %v1360_v0, %s3987_s13  ;;  %v2560_v54 = vsel %vm2550_vm13, %v2527_v5, %v2299_v63  ;;  %v2111_v56 = vpop.permute.xlu0 %2110  ;;  %v1758_v63 = vsel %vm5406_vm8, %v770_v22, 0.0  ;;  %vm6528_vm8 = vmmov %vm6525_vm3  ;;  %v6532_v5 = vld [vmem:[#allocation35_spill] sm:$0xff] }
 0x1c0   : > { %v2597_v60 = vsel %vm2583_vm9, %v2560_v54, %v2347_v21  ;;  %v1776_v4 = vpack.c.bf16 %v769_v57, %v1758_v63  ;;  %v2433_v28 = vsel %vm2419_vm12, %v2391_v37, %v2111_v56  ;;  %vm6537_vm5 = vmmov %vm6531_vm1  ;;  %v6538_v21 = vld [vmem:[#allocation38_spill] sm:$0xff] }
 0x1c1   : > { %v2109_v1 = vpop.permute.xlu1 %2108  ;;  %2824 = vmatmul.mubr.bf16.gmra.mxu1 %v2597_v60  ;;  %vm6541_vm14 = vmmov %vm6525_vm3 }
 0x1c2   : > { %3584 = vmatprep.mubr.msk.bf16.mxu1 %vm6515_vm15, %v6514_v52  ;;  %2078 = vrot.lane.b32.xlu0 %v1119_v38, %s3986_s9  ;;  %v2431_v17 = vsel %vm2419_vm12, %v2388_v40, %v2109_v1  ;;  %vm6536_vm15 = vmmov %vm6529_vm0 }
 0x1c3   : > { %2222 = vrot.lane.b32.xlu1 %v1120_v55, %s3989_s20  ;;  %v2207_v51 = vpop.permute.xlu0 %2206  ;;  %v2464_v14 = vsel %vm6522_vm2, %v2431_v17, %v2157_v11  ;;  %vm6542_vm2 = vmmov %vm6529_vm0 }
 0x1c4   : > { %v2496_v31 = vsel %vm6523_vm7, %v2464_v14, %v5705_v46  ;;  %v2397_v14 = vsel %vm6541_vm14, %v6540_v42, %v5727_v15  ;;  %vm6543_vm7 = vmmov %vm6531_vm1 }
 0x1c5   : > { %v2351_v23 = vpop.permute.xlu1 %2350  ;;  %v2529_v29 = vsel %vm2517_vm6, %v2496_v31, %v2253_v10  ;;  %v6527_v10 = vld [vmem:[#allocation11_spill] sm:$0xff] }
 0x1c6   : > { %2366 = vrot.lane.b32.xlu0 %v1489_v24, %s3990_s14 }
 0x1c7   : > { %2080 = vrot.lane.b32.xlu1 %v1120_v55, %s3986_s9  ;;  %v2065_v12 = vpop.permute.xlu0 %2064 }
 0x1c8   : > { %v2394_v54 = vsel %vm6533_vm10, %v6532_v5, %v2065_v12 }
 0x1c9   : > { %v2209_v38 = vpop.permute.xlu1 %2208 }
 0x1ca   : > { %2316 = vrot.lane.b32.xlu0 %v1775_v9, %s3993_s16 }
 0x1cb   : > { %2318 = vrot.lane.b32.xlu1 %v1776_v4, %s3993_s16  ;;  %v2303_v11 = vpop.permute.xlu0 %2302 }
 0x1cd   : > { %v2301_v55 = vpop.permute.xlu1 %2300 }
 0x1ce   : > { %v2562_v46 = vsel %vm2550_vm13, %v2529_v29, %v2301_v55  ;;  %2174 = vrot.lane.b32.xlu0 %v1472_v58, %s3992_s21 }
 0x1cf   : > { %2272 = vrot.lane.b32.xlu1 %v1601_v35, %s3991_s17  ;;  %v2600_v18 = vsel %vm2583_vm9, %v2562_v46, %v2349_v26  ;;  %v2161_v62 = vpop.permute.xlu0 %2160  ;;  %v6545_v46 = vld [vmem:[#allocation37_spill] sm:$0xff] }
 0x1d0   : > { %2832 = vmatmul.mubr.bf16.gmra.mxu1 %v2600_v18 }
 0x1d1   : > { %v2159_v13 = vpop.permute.xlu1 %2158  ;;  %3585 = vmatprep.mubr.msk.bf16.mxu1 %vm6528_vm8, %v6527_v10  ;;  %vm6546_vm8 = vmmov %vm6525_vm3 }
 0x1d2   : > { %v2466_v43 = vsel %vm6529_vm0, %v2433_v28, %v2159_v13  ;;  %2270 = vrot.lane.b32.xlu0 %v1600_v39, %s3991_s17  ;;  %v6547_v28 = vld [vmem:[#allocation33_spill] sm:$0xff]  ;;  %vm6548_vm0 = vmmov %vm6525_vm3 }
 0x1d3   : > { %2176 = vrot.lane.b32.xlu1 %v1473_v30, %s3992_s21  ;;  %v2355_v53 = vpop.permute.xlu0 %2354  ;;  %v2498_v16 = vsel %vm6531_vm1, %v2466_v43, %v2207_v51  ;;  %v6544_v30 = vld [vmem:[#allocation40_spill] sm:$0xff]  ;;  %vm6549_vm1 = vmmov %vm6542_vm2 }
 0x1d4   : > { %vm6551_vm10 = vmmov %vm6549_vm1 }
 0x1d5   : > { %v2255_v6 = vpop.permute.xlu1 %2254  ;;  %vm6558_vm14 = vmmov %vm6549_vm1 }
 0x1d6   : > { %v2531_v0 = vsel %vm2517_vm6, %v2498_v16, %v2255_v6  ;;  %2224 = vrot.lane.b32.xlu0 %v1489_v24, %s3989_s20 }
 0x1d7   : > { %2368 = vrot.lane.b32.xlu1 %v6530_v61, %s3990_s14  ;;  %v2564_v45 = vsel %vm2550_vm13, %v2531_v0, %v2303_v11  ;;  %v2213_v26 = vpop.permute.xlu0 %2212  ;;  %s3994_s14 = smov [#allocation2]  }
 0x1d8   : > { %v2603_v32 = vsel %vm2583_vm9, %v2564_v45, %v2351_v23  ;;  %s3927_s17 = sshll.u32 %s3994_s14, 4  ;;  %s3928_s17 = int_to_ptr.vmem [resolvable:$false] %s3927_s17 }
 0x1d9   : > { %2840 = vmatmul.mubr.bf16.gmra.mxu1 %v2603_v32  ;;  %s3929_s21 = scalar_lea.vmem %s3928_s17, 4096 }
 0x1da   : > { %3586 = vmatprep.mubr.msk.bf16.mxu1 %vm6535_vm11, %v6534_v25  ;;  %2128 = vrot.lane.b32.xlu0 %v1361_v44, %s3987_s13  ;;  %vm6552_vm11 = vmmov %vm6537_vm5 }
 0x1db   : > { %v2071_v7 = vpop.permute.xlu0 %2070 }
 0x1dd   : > { %v2113_v20 = vpop.permute.xlu1 %2112 }
 0x1de   : > { %v2435_v22 = vsel %vm2419_vm12, %v2394_v54, %v2113_v20  ;;  %2320 = vrot.lane.b32.xlu0 %v6530_v61, %s3993_s16  ;;  %v6554_v54 = vld [vmem:[#allocation36_spill] sm:$0xff]  ;;  %s3463_s16 = sshll.u32 %s6019_s15, 4  ;;  %s6130_s16 = int_to_ptr.vmem [resolvable:$true] %s3463_s16 }
 0x1df   : > { %v2468_v60 = vsel %vm6536_vm15, %v2435_v22, %v2161_v62  ;;  %v2257_v1 = vpop.permute.xlu0 %2256  ;;  %v2373_v62 = vsel %vm6548_vm0, 0.0|0.0, %v6547_v28  ;;  %vm6553_vm15 = vmmov %vm6537_vm5  ;;  %v6556_v22 = vld [vmem:[#allocation41_spill] sm:$0xff]  ;;  %s3923_s13 = scalar_lea.vmem %s6130_s16, 2048  ;;  %p3930_p0 = scmp.lt.s32.totalorder %s6130_s16, %s3928_s17 }
 0x1e0   : > { %v2500_v56 = vsel %vm6537_vm5, %v2468_v60, %v2209_v38  ;;  %v2421_v39 = vsel %vm2419_vm12, %v2373_v62, %v6550_v3  ;;  %vm6555_vm5 = vmmov %vm6548_vm0  ;;  %v6574_v3 = vld [vmem:[#allocation45_spill] sm:$0xff]  ;;  %p3924_p11 = scmp.ne.s32.totalorder %s6130_s16, %s3923_s13  ;;  %p3931_p1 = scmp.lt.s32.totalorder %s3929_s21, %s3923_s13 }
 0x1e1   : > { %v2069_v2 = vpop.permute.xlu1 %2068  ;;  %v2533_v8 = vsel %vm2517_vm6, %v2500_v56, %v2257_v1 }
 0x1e2   : > { %v2400_v50 = vsel %vm6546_vm8, %v6545_v46, %v2069_v2  ;;  %vm6564_vm8 = vmmov %vm6549_vm1  ;;  %p3925_p12 = pnand %p3924_p11, %p4074_p5  ;;  %p3932_p2 = por %p3931_p1, %p3930_p0 }
 0x1e3   : > { %v2353_v63 = vpop.permute.xlu0 %2352 }
 0x1e4   : > { %p3926_p13 = pneg %p3925_p12 }
 0x1e5   : > { %v2305_v52 = vpop.permute.xlu1 %2304 }
 0x1e6   : > { %v2566_v57 = vsel %vm2550_vm13, %v2533_v8, %v2305_v52  ;;  %v6560_v8 = vld [vmem:[#allocation39_spill] sm:$0xff]  ;;  %p3933_p3 = pnand %p3932_p2, %p3926_p13 }
 0x1e7   : > { %v2606_v40 = vsel %vm2583_vm9, %v2566_v57, %v2353_v63  ;;  %v2115_v17 = vpop.permute.xlu0 %2114 }
 0x1e8   : > { %2848 = vmatmul.mubr.bf16.gmra.mxu1 %v2606_v40  ;;  %v2437_v12 = vsel %vm2419_vm12, %v2397_v14, %v2115_v17 }
 0x1e9   : > { %v2165_v33 = vpop.permute.xlu1 %2164  ;;  %3587 = vmatprep.mubr.msk.bf16.mxu1 %vm6539_vm4, %v6538_v21  ;;  %vm6557_vm4 = vmmov %vm6548_vm0  ;;  %v6562_v21 = vld [vmem:[#allocation42_spill] sm:$0xff] }
 0x1eb   : > { %v2211_v51 = vpop.permute.xlu0 %2210 }
 0x1ed   : > { %v2261_v24 = vpop.permute.xlu1 %2260 }
 0x1ef   : > { %v2163_v4 = vpop.permute.xlu0 %2162 }
 0x1f0   : > { %v2470_v38 = vsel %vm6542_vm2, %v2437_v12, %v2163_v4  ;;  %vm6559_vm2 = vmmov %vm6543_vm7 }
 0x1f1   : > { %v2357_v23 = vpop.permute.xlu1 %2356  ;;  %v2502_v31 = vsel %vm6543_vm7, %v2470_v38, %v2211_v51  ;;  %vm6561_vm7 = vmmov %vm6548_vm0  ;;  %v6566_v38 = vld [vmem:[#allocation43_spill] sm:$0xff] }
 0x1f3   : > { %v2259_v9 = vpop.permute.xlu0 %2258 }
 0x1f4   : > { %v2535_v34 = vsel %vm2517_vm6, %v2502_v31, %v2259_v9 }
 0x1f5   : > { %v2119_v19 = vpop.permute.xlu1 %2118 }
 0x1f7   : > { %v2307_v59 = vpop.permute.xlu0 %2306 }
 0x1f8   : > { %v2568_v55 = vsel %vm2550_vm13, %v2535_v34, %v2307_v59 }
 0x1f9   : > { %v2215_v35 = vpop.permute.xlu1 %2214  ;;  %v2609_v29 = vsel %vm2583_vm9, %v2568_v55, %v2355_v53 }
 0x1fa   : > { %2856 = vmatmul.mubr.bf16.gmra.mxu1 %v2609_v29 }
 0x1fb   : > { %v2117_v58 = vpop.permute.xlu0 %2116  ;;  %3588 = vmatprep.mubr.msk.bf16.mxu1 %vm6525_vm3, %v6544_v30  ;;  %vm6563_vm3 = vmmov %vm6548_vm0 }
 0x1fc   : > { %v2439_v18 = vsel %vm2419_vm12, %v2400_v50, %v2117_v58  ;;  %vm6565_vm0 = vmmov %vm6559_vm2 }
 0x1fd   : > { %v2073_v11 = vpop.permute.xlu1 %2072  ;;  %v2472_v13 = vsel %vm6549_vm1, %v2439_v18, %v2165_v33  ;;  %vm6567_vm1 = vmmov %vm6563_vm3 }
 0x1fe   : > { %v2504_v6 = vsel %vm6552_vm11, %v2472_v13, %v2213_v26  ;;  %v2406_v57 = vsel %vm6561_vm7, %v6560_v8, %v2073_v11  ;;  %vm6570_vm11 = vmmov %vm6564_vm8 }
 0x1ff   : > { %v2537_v47 = vsel %vm2517_vm6, %v2504_v6, %v2261_v24  ;;  %vm6579_vm7 = vmmov %vm6567_vm1 }
 0x200   : > { %v2359_v41 = vpop.permute.xlu0 %2358 }
 0x201   : > { %v2311_v15 = vpop.permute.xlu1 %2310 }
 0x204   : > { %v2217_v10 = vpop.permute.xlu0 %2216 }
 0x205   : > { %v2169_v37 = vpop.permute.xlu1 %2168 }
 0x208   : > { %v2309_v45 = vpop.permute.xlu0 %2308 }
 0x209   : > { %v2147_v43 = vpop.permute.xlu1 %2146  ;;  %v2570_v44 = vsel %vm2550_vm13, %v2537_v47, %v2309_v45 }
 0x20a   : > { %v2454_v53 = vsel %vm6551_vm10, %v2421_v39, %v2147_v43  ;;  %v2612_v26 = vsel %vm2583_vm9, %v2570_v44, %v2357_v23  ;;  %vm6569_vm10 = vmmov %vm6567_vm1 }
 0x20b   : > { %v2486_v16 = vsel %vm6553_vm15, %v2454_v53, %v5565_v48  ;;  %v2403_v48 = vsel %vm6555_vm5, %v6554_v54, %v2071_v7  ;;  %2864 = vmatmul.mubr.bf16.gmra.mxu1 %v2612_v26  ;;  %vm6571_vm15 = vmmov %vm6565_vm0 }
 0x20c   : > { %v2519_v0 = vsel %vm2517_vm6, %v2486_v16, %v5580_v49  ;;  %v2441_v49 = vsel %vm2419_vm12, %v2403_v48, %v2119_v19  ;;  %v2167_v25 = vpop.permute.xlu0 %2166  ;;  %3589 = vmatprep.mubr.msk.bf16.mxu1 %vm6557_vm4, %v6556_v22  ;;  %vm6573_vm5 = vmmov %vm6567_vm1 }
 0x20d   : > { %v2265_v32 = vpop.permute.xlu1 %2264  ;;  %v2552_v20 = vsel %vm2550_vm13, %v2519_v0, %v5591_v27  ;;  %v2474_v27 = vsel %vm6558_vm14, %v2441_v49, %v2167_v25  ;;  %vm6575_vm4 = vmmov %vm6567_vm1  ;;  %v6580_v49 = vld [vmem:[#allocation48_spill] sm:$0xff] }
 0x20e   : > { %v2585_v5 = vsel %vm2583_vm9, %v2552_v20, %v5555_v36  ;;  %v2506_v60 = vsel %vm6559_vm2, %v2474_v27, %v2215_v35  ;;  %v6568_v35 = vld [vmem:[#allocation44_spill] sm:$0xff]  ;;  %vm6576_vm14 = vmmov %vm6564_vm8 }
 0x20f   : > { %2792 = vmatmul.mubr.bf16.vlgmr.msra.gmra.mxu0 %v2585_v5  ;;  %vm6577_vm2 = vmmov %vm6565_vm0 }
 0x210   : > { %v2263_v56 = vpop.permute.xlu0 %2262 }
 0x211   : > { %v2361_v2 = vpop.permute.xlu1 %2360  ;;  %v2539_v1 = vsel %vm2517_vm6, %v2506_v60, %v2263_v56 }
 0x212   : > { %v2572_v52 = vsel %vm2550_vm13, %v2539_v1, %v2311_v15 }
 0x213   : > { %v2615_v7 = vsel %vm2583_vm9, %v2572_v52, %v2359_v41  ;;  %v6572_v41 = vld [vmem:[#allocation46_spill] sm:$0xff] }
 0x214   : > { %v2121_v63 = vpop.permute.xlu0 %2120  ;;  %2872 = vmatmul.mubr.bf16.gmra.mxu1 %v2615_v7  ;;  %v6582_v7 = vld [vmem:[#allocation9_spill] sm:$0xff] }
 0x215   : > { %v2123_v36 = vpop.permute.xlu1 %2122  ;;  %v2443_v40 = vsel %vm2419_vm12, %v2406_v57, %v2121_v63  ;;  %3590 = vmatprep.mubr.msk.bf16.mxu1 %vm6563_vm3, %v6562_v21  ;;  %vm6581_vm3 = vmmov %vm6567_vm1 }
 0x216   : > { %v2476_v17 = vsel %vm6564_vm8, %v2443_v40, %v2169_v37 }
 0x217   : > { %v2508_v24 = vsel %vm6565_vm0, %v2476_v17, %v2217_v10 }
 0x218   : > { %v2313_v51 = vpop.permute.xlu0 %2312  ;;  %v2541_v23 = vsel %vm2517_vm6, %v2508_v24, %v2265_v32  ;;  %v6578_v32 = vld [vmem:[#allocation47_spill] sm:$0xff] }
 0x219   : > { %v2219_v33 = vpop.permute.xlu1 %2218  ;;  %v2574_v19 = vsel %vm2550_vm13, %v2541_v23, %v2313_v51 }
 0x21a   : > { %v2618_v42 = vsel %vm2583_vm9, %v2574_v19, %v2361_v2 }
 0x21c   : > { %v2075_v14 = vpop.permute.xlu0 %2074  ;;  %2880 = vmatmul.mubr.bf16.gmra.mxu1 %v2618_v42 }
 0x21d   : > { %v2315_v4 = vpop.permute.xlu1 %2314  ;;  %v2409_v9 = vsel %vm6567_vm1, %v6566_v38, %v2075_v14  ;;  %3591 = vmatprep.mubr.msk.bf16.mxu1 %vm6569_vm10, %v6568_v35  ;;  %vm6583_vm10 = vmmov %vm6564_vm8 }
 0x21e   : > { %v2445_v34 = vsel %vm2419_vm12, %v2409_v9, %v2123_v36 }
 0x220   : > { %v2171_v31 = vpop.permute.xlu0 %2170 }
 0x221   : > { %v2077_v12 = vpop.permute.xlu1 %2076  ;;  %v2478_v11 = vsel %vm6570_vm11, %v2445_v34, %v2171_v31  ;;  %vm6584_vm11 = vmmov %vm6565_vm0 }
 0x222   : > { %v2510_v29 = vsel %vm6571_vm15, %v2478_v11, %v2219_v33  ;;  %v2412_v39 = vsel %vm6575_vm4, %v6574_v3, %v2077_v12  ;;  %vm6589_vm15 = vmmov %vm6567_vm1 }
 0x223   : > { %vm6591_vm4 = vmmov %vm6567_vm1 }
 0x224   : > { %v2267_v55 = vpop.permute.xlu0 %2266 }
 0x225   : > { %v2173_v59 = vpop.permute.xlu1 %2172  ;;  %v2543_v30 = vsel %vm2517_vm6, %v2510_v29, %v2267_v55 }
 0x226   : > { %v2576_v50 = vsel %vm2550_vm13, %v2543_v30, %v2315_v4  ;;  %v5950_v4 = vld [vmem:[%s6182_s4] ss:$0 sm:$0xff] }
 0x228   : > { %v2363_v15 = vpop.permute.xlu0 %2362 }
 0x229   : > { %v2269_v58 = vpop.permute.xlu1 %2268  ;;  %v2621_v18 = vsel %vm2583_vm9, %v2576_v50, %v2363_v15 }
 0x22a   : > { %2888 = vmatmul.mubr.bf16.gmra.mxu1 %v2621_v18 }
 0x22b   : > { %3592 = vmatprep.mubr.msk.bf16.mxu1 %vm6573_vm5, %v6572_v41  ;;  %vm6590_vm5 = vmmov %vm6567_vm1 }
 0x22c   : > { %v2125_v37 = vpop.permute.xlu0 %2124 }
 0x22d   : > { %v2365_v46 = vpop.permute.xlu1 %2364  ;;  %v2447_v43 = vsel %vm2419_vm12, %v2412_v39, %v2125_v37 }
 0x22e   : > { %v2480_v53 = vsel %vm6576_vm14, %v2447_v43, %v2173_v59  ;;  %vm6592_vm14 = vmmov %vm6567_vm1 }
 0x230   : > { %v2221_v62 = vpop.permute.xlu0 %2220 }
 0x231   : > { %v2127_v28 = vpop.permute.xlu1 %2126  ;;  %v2512_v16 = vsel %vm6577_vm2, %v2480_v53, %v2221_v62  ;;  %vm6593_vm2 = vmmov %vm6567_vm1 }
 0x232   : > { %v2545_v45 = vsel %vm2517_vm6, %v2512_v16, %v2269_v58 }
 0x234   : > { %v2079_v10 = vpop.permute.xlu0 %2078 }
 0x235   : > { %v2223_v13 = vpop.permute.xlu1 %2222  ;;  %v2415_v20 = vsel %vm6579_vm7, %v6578_v32, %v2079_v10  ;;  %vm6594_vm7 = vmmov %vm6567_vm1 }
 0x236   : > { %v2449_v48 = vsel %vm2419_vm12, %v2415_v20, %v2127_v28 }
 0x238   : > { %v2367_v6 = vpop.permute.xlu0 %2366 }
 0x239   : > { %v2081_v0 = vpop.permute.xlu1 %2080 }
 0x23a   : > { %v2418_v8 = vsel %vm6567_vm1, %v6582_v7, %v2081_v0 }
 0x23c   : > { %v2317_v47 = vpop.permute.xlu0 %2316 }
 0x23d   : > { %v2578_v44 = vsel %vm2550_vm13, %v2545_v45, %v2317_v47  ;;  %v2319_v26 = vpop.permute.xlu1 %2318 }
 0x23e   : > { %v2624_v5 = vsel %vm2583_vm9, %v2578_v44, %v2365_v46 }
 0x23f   : > { %2896 = vmatmul.mubr.bf16.gmra.mxu1 %v2624_v5 }
 0x240   : > { %v2175_v54 = vpop.permute.xlu0 %2174  ;;  %3593 = vmatprep.mubr.msk.bf16.mxu1 %vm6581_vm3, %v6580_v49  ;;  %vm6595_vm3 = vmmov %vm6567_vm1 }
 0x241   : > { %v2482_v25 = vsel %vm6564_vm8, %v2449_v48, %v2175_v54  ;;  %v2273_v27 = vpop.permute.xlu1 %2272  ;;  %vm6596_vm8 = vmmov %vm6567_vm1 }
 0x242   : > { %v2514_v2 = vsel %vm6565_vm0, %v2482_v25, %v2223_v13  ;;  %vm6597_vm0 = vmmov %vm6567_vm1 }
 0x244   : > { %v2271_v22 = vpop.permute.xlu0 %2270 }
 0x245   : > { %v2547_v60 = vsel %vm2517_vm6, %v2514_v2, %v2271_v22  ;;  %v2177_v52 = vpop.permute.xlu1 %2176 }
 0x246   : > { %v2580_v56 = vsel %vm2550_vm13, %v2547_v60, %v2319_v26 }
 0x247   : > { %v2627_v36 = vsel %vm2583_vm9, %v2580_v56, %v2367_v6 }
 0x248   : > { %v2225_v1 = vpop.permute.xlu0 %2224  ;;  %2904 = vmatmul.mubr.bf16.gmra.mxu1 %v2627_v36 }
 0x249   : > { %2911 = vmatprep.mubr.bf16.mxu1 %v6530_v61  ;;  %v2369_v21 = vpop.permute.xlu1 %2368  ;;  %v3890_v61 = vld [vmem:[%s6183_s5] sm:$0xff]  }
 0x24a   : > { %3760 = vmatprep.subr.bf16.mxu0 %v3890_v61 }
 0x24b   : > { %3761 = vmatpush3.bf16.msra.mxu0 %v3890_v61 }
 0x24c   : > { %v2129_v57 = vpop.permute.xlu0 %2128 }
 0x24d   : > { %v2451_v63 = vsel %vm2419_vm12, %v2418_v8, %v2129_v57  ;;  %vm6586_vm12 = vmmov %vm6567_vm1 }
 0x24e   : > { %v2484_v33 = vsel %vm6583_vm10, %v2451_v63, %v2177_v52  ;;  %vm6599_vm10 = vmmov %vm6597_vm0 }
 0x24f   : > { %v2516_v40 = vsel %vm6584_vm11, %v2484_v33, %v2225_v1  ;;  %vm6600_vm11 = vmmov %vm6597_vm0 }
 0x250   : > { %v2321_v17 = vpop.permute.xlu0 %2320  ;;  %v2549_v24 = vsel %vm2517_vm6, %v2516_v40, %v2273_v27  ;;  %vm6587_vm6 = vmmov %vm6567_vm1 }
 0x251   : > { %v2582_v51 = vsel %vm2550_vm13, %v2549_v24, %v2321_v17  ;;  %vm6588_vm13 = vmmov %vm6567_vm1 }
 0x252   : > { %v2630_v23 = vsel %vm2583_vm9, %v2582_v51, %v2369_v21  ;;  %vm6585_vm9 = vmmov %vm6567_vm1 }
 0x253   : > { %2912 = vmatmul.mubr.bf16.gmra.mxu1 %v2630_v23  ;;  %vm6598_vm1 = vmmov %vm6597_vm0 }
 0x25c   : > { %v2801_v19 = vpop.f32.mrf.mxu1 }
 0x25d   : > { %v2802_v14 = vadd.f32 %v5950_v4, %v2801_v19 }
 0x25e   : > { %v2803_v42 = vpop.f32.mrf.mxu1 }
 0x25f   : > { %v2922_v35 = vmax.f32 %v2802_v14, 0.0 }
 0x260   : > { %v2804_v12 = vpop.f32.mrf.mxu1 }
 0x261   : > { %v2805_v38 = vadd.f32 %v5950_v4, %v2804_v12 }
 0x262   : > { %v2806_v9 = vpop.f32.mrf.mxu1 }
 0x263   : > { %v2923_v31 = vmax.f32 %v2805_v38, 0.0 }
 0x265   : > { %v5954_v34 = vpack.c.bf16 %v2923_v31, %v2922_v35  ;;  %v2809_v59 = vpop.f32.mrf.mxu1 }
 0x266   : > { %v2810_v55 = vadd.f32 %v5950_v4, %v2809_v59 }
 0x267   : > { %v2811_v11 = vpop.f32.mrf.mxu1 }
 0x268   : > { %v2924_v15 = vmax.f32 %v2810_v55, 0.0 }
 0x269   : > { %v2812_v29 = vpop.f32.mrf.mxu1 }
 0x26a   : > { %v2813_v58 = vadd.f32 %v5950_v4, %v2812_v29 }
 0x26b   : > { %v2814_v30 = vpop.f32.mrf.mxu1 }
 0x26c   : > { %v2925_v46 = vmax.f32 %v2813_v58, 0.0 }
 0x26e   : > { %v2954_v50 = vpack.c.bf16 %v2925_v46, %v2924_v15 }
 0x278   : > { %v2817_v18 = vpop.f32.mrf.mxu1 }
 0x279   : > { %v2818_v37 = vadd.f32 %v5950_v4, %v2817_v18 }
 0x27a   : > { %v2819_v41 = vpop.f32.mrf.mxu1 }
 0x27b   : > { %v2926_v3 = vmax.f32 %v2818_v37, 0.0 }
 0x27c   : > { %v2820_v28 = vpop.f32.mrf.mxu1 }
 0x27d   : > { %v2821_v62 = vadd.f32 %v5950_v4, %v2820_v28 }
 0x27e   : > { %v2822_v13 = vpop.f32.mrf.mxu1 }
 0x27f   : > { %v2927_v39 = vmax.f32 %v2821_v62, 0.0 }
 0x281   : > { %v2955_v10 = vpack.c.bf16 %v2927_v39, %v2926_v3  ;;  %v2825_v43 = vpop.f32.mrf.mxu1 }
 0x282   : > { %v2826_v6 = vadd.f32 %v5950_v4, %v2825_v43 }
 0x283   : > { %v2827_v53 = vpop.f32.mrf.mxu1 }
 0x284   : > { %v2928_v45 = vmax.f32 %v2826_v6, 0.0 }
 0x285   : > { %v2828_v16 = vpop.f32.mrf.mxu1 }
 0x286   : > { %v2829_v0 = vadd.f32 %v5950_v4, %v2828_v16 }
 0x287   : > { %v2830_v47 = vpop.f32.mrf.mxu1 }
 0x288   : > { %v2929_v32 = vmax.f32 %v2829_v0, 0.0 }
 0x28a   : > { %v2956_v20 = vpack.c.bf16 %v2929_v32, %v2928_v45 }
 0x290   : > { %v2833_v44 = vpop.f32.mrf.mxu1 }
 0x291   : > { %v2834_v26 = vadd.f32 %v5950_v4, %v2833_v44 }
 0x292   : > { %v2835_v5 = vpop.f32.mrf.mxu1 }
 0x293   : > { %v2930_v25 = vmax.f32 %v2834_v26, 0.0 }
 0x294   : > { %v2836_v54 = vpop.f32.mrf.mxu1 }
 0x295   : > { %v2837_v48 = vadd.f32 %v5950_v4, %v2836_v54 }
 0x296   : > { %v2838_v49 = vpop.f32.mrf.mxu1 }
 0x297   : > { %v2931_v22 = vmax.f32 %v2837_v48, 0.0 }
 0x299   : > { %v2957_v2 = vpack.c.bf16 %v2931_v22, %v2930_v25  ;;  %v2841_v27 = vpop.f32.mrf.mxu1 }
 0x29a   : > { %v2842_v56 = vadd.f32 %v5950_v4, %v2841_v27 }
 0x29b   : > { %v2843_v60 = vpop.f32.mrf.mxu1 }
 0x29c   : > { %v2932_v7 = vmax.f32 %v2842_v56, 0.0 }
 0x29d   : > { %v2844_v36 = vpop.f32.mrf.mxu1 }
 0x29e   : > { %v2845_v1 = vadd.f32 %v5950_v4, %v2844_v36 }
 0x29f   : > { %v2846_v52 = vpop.f32.mrf.mxu1 }
 0x2a0   : > { %v2933_v8 = vmax.f32 %v2845_v1, 0.0 }
 0x2a2   : > { %v2958_v57 = vpack.c.bf16 %v2933_v8, %v2932_v7 }
 0x2a8   : > { %v2849_v63 = vpop.f32.mrf.mxu1 }
 0x2a9   : > { %v2850_v3 = vadd.f32 %v5950_v4, %v2849_v63 }
 0x2aa   : > { %v2851_v33 = vpop.f32.mrf.mxu1 }
 0x2ab   : > { %v2934_v43 = vmax.f32 %v2850_v3, 0.0  ;;  %v3908_v3 = vld [vmem:[%s4098_s23] sm:$0xff]  }
 0x2ac   : > { %v2852_v40 = vpop.f32.mrf.mxu1 }
 0x2ad   : > { %v2853_v62 = vadd.f32 %v5950_v4, %v2852_v40 }
 0x2ae   : > { %v2854_v21 = vpop.f32.mrf.mxu1 }
 0x2ba   : > { %v2857_v17 = vpop.f32.mrf.mxu1 }
 0x2bc   : > { %v2859_v24 = vpop.f32.mrf.mxu1 }
 0x2be   : > { %v2860_v51 = vpop.f32.mrf.mxu1 }
 0x2bf   : > { %v2861_v13 = vadd.f32 %v5950_v4, %v2860_v51 }
 0x2c0   : > { %v2862_v23 = vpop.f32.mrf.mxu1 }
 0x2c1   : > { %v2937_v39 = vmax.f32 %v2861_v13, 0.0 }
 0x2cb   : > { %v2865_v19 = vpop.f32.mrf.mxu1 }
 0x2cc   : > { %v2866_v32 = vadd.f32 %v5950_v4, %v2865_v19 }
 0x2cd   : > { %v2867_v12 = vpop.f32.mrf.mxu1 }
 0x2ce   : > { %v2938_v48 = vmax.f32 %v2866_v32, 0.0  ;;  %v3909_v32 = vld [vmem:[%s4098_s23 + $0x18] sm:$0xff]  }
 0x2cf   : > { %v2793_v61 = vpop.f32.mrf.mxu0  ;;  %v2868_v9 = vpop.f32.mrf.mxu1 }
 0x2d0   : > { %v2794_v14 = vadd.f32 %v5950_v4, %v2793_v61  ;;  %v2869_v16 = vadd.f32 %v5950_v4, %v2868_v9 }
 0x2d1   : > { %v2795_v42 = vpop.f32.mrf.mxu0  ;;  %v2870_v55 = vpop.f32.mrf.mxu1 }
 0x2d2   : > { %v2920_v59 = vmax.f32 %v2794_v14, 0.0  ;;  %v2939_v5 = vmax.f32 %v2869_v16, 0.0 }
 0x2d3   : > { %v2796_v38 = vpop.f32.mrf.mxu0 }
 0x2d4   : > { %v2797_v35 = vadd.f32 %v5950_v4, %v2796_v38  ;;  %v2873_v58 = vpop.f32.mrf.mxu1  ;;  %v2961_v25 = vpack.c.bf16 %v2939_v5, %v2938_v48 }
 0x2d5   : > { %v2798_v31 = vpop.f32.mrf.mxu0  ;;  %v2874_v44 = vadd.f32 %v5950_v4, %v2873_v58 }
 0x2d6   : > { %v2921_v11 = vmax.f32 %v2797_v35, 0.0  ;;  %v2875_v30 = vpop.f32.mrf.mxu1 }
 0x2d7   : > { %v2940_v49 = vmax.f32 %v2874_v44, 0.0 }
 0x2d8   : > { %v2952_v29 = vpack.c.bf16 %v2921_v11, %v2920_v59  ;;  %v2876_v15 = vpop.f32.mrf.mxu1 }
 0x2d9   : > { %v2877_v45 = vadd.f32 %v5950_v4, %v2876_v15 }
 0x2da   : > { %3762 = vmatprep.mubr.msk.bf16.mxu0 %vm6585_vm9, %v2952_v29  ;;  %v2878_v46 = vpop.f32.mrf.mxu1  ;;  %vm3416_vm9 = vcmask 519168  }
 0x2db   : > { %3763 = vmatmul.mubr.msk.bf16.vlgmr.msra.gmra.mxu0 %vm6586_vm12, %v5954_v34  ;;  %v2858_v34 = vadd.f32 %v5950_v4, %v2857_v17  ;;  %v2941_v54 = vmax.f32 %v2877_v45, 0.0 }
 0x2dc   : > { %3766 = vmatprep.mubr.msk.bf16.mxu0 %vm6587_vm6, %v2954_v50  ;;  %v2881_v18 = vpop.f32.mrf.mxu1  ;;  %v2935_v50 = vmax.f32 %v2853_v62, 0.0 }
 0x2dd   : > { %v2936_v53 = vmax.f32 %v2858_v34, 0.0  ;;  %v2882_v60 = vadd.f32 %v5950_v4, %v2881_v18  ;;  %v3192_v34 = vunpack.c.l.bf16 %v3908_v3 }
 0x2de   : > { %v2883_v41 = vpop.f32.mrf.mxu1  ;;  %v2959_v6 = vpack.c.bf16 %v2935_v50, %v2934_v43 }
 0x2df   : > { %v2960_v47 = vpack.c.bf16 %v2937_v39, %v2936_v53  ;;  %v2942_v52 = vmax.f32 %v2882_v60, 0.0 }
 0x2e0   : > { %v2884_v37 = vpop.f32.mrf.mxu1 }
 0x2e1   : > { %v2885_v22 = vadd.f32 %v5950_v4, %v2884_v37  ;;  %v6006_v37 = vld [vmem:[%s6184_s6] ss:$0 sm:$0xff] }
 0x2e2   : > { %v2886_v28 = vpop.f32.mrf.mxu1 }
 0x2e3   : > { %3767 = vmatmul.mubr.msk.bf16.gmra.mxu0 %vm6588_vm13, %v2955_v10  ;;  %v2943_v36 = vmax.f32 %v2885_v22, 0.0  ;;  %v3907_v28 = vld [vmem:[%s4098_s23 + $0x8] sm:$0xff]  }
 0x2e4   : > { %3770 = vmatprep.mubr.msk.bf16.mxu0 %vm6589_vm15, %v2956_v20  ;;  %v3194_v62 = vunpack.c.l.bf16 %v3907_v28 }
 0x2e5   : > { %v2963_v8 = vpack.c.bf16 %v2943_v36, %v2942_v52  ;;  %v3199_v36 = vunpack.c.h.bf16 %v3909_v32 }
 0x2ea   : > { %v2889_v10 = vpop.f32.mrf.mxu1 }
 0x2eb   : > { %3771 = vmatmul.mubr.msk.bf16.gmra.mxu0 %vm6590_vm5, %v2957_v2  ;;  %v2962_v2 = vpack.c.bf16 %v2941_v54, %v2940_v49  ;;  %v2890_v56 = vadd.f32 %v5950_v4, %v2889_v10  ;;  %v3195_v10 = vunpack.c.h.bf16 %v3907_v28  ;;  %v3910_v49 = vld [vmem:[%s4098_s23 + $0x10] sm:$0xff]  }
 0x2ec   : > { %3774 = vmatprep.mubr.msk.bf16.mxu0 %vm6591_vm4, %v2958_v57  ;;  %v2891_v0 = vpop.f32.mrf.mxu1 }
 0x2ed   : > { %v2944_v7 = vmax.f32 %v2890_v56, 0.0 }
 0x2ee   : > { %v2892_v20 = vpop.f32.mrf.mxu1 }
 0x2ef   : > { %v2893_v27 = vadd.f32 %v5950_v4, %v2892_v20  ;;  %v3198_v20 = vunpack.c.l.bf16 %v3909_v32 }
 0x2f0   : > { %v2894_v26 = vpop.f32.mrf.mxu1 }
 0x2f1   : > { %v2945_v1 = vmax.f32 %v2893_v27, 0.0 }
 0x2f3   : > { %3775 = vmatmul.mubr.msk.bf16.gmra.mxu0 %vm6592_vm14, %v2959_v6  ;;  %v2964_v57 = vpack.c.bf16 %v2945_v1, %v2944_v7  ;;  %v3193_v6 = vunpack.c.h.bf16 %v3908_v3 }
 0x2f4   : > { %3778 = vmatprep.mubr.msk.bf16.mxu0 %vm6593_vm2, %v2960_v47 }
 0x2fb   : > { %3779 = vmatmul.mubr.msk.bf16.gmra.mxu0 %vm6594_vm7, %v2961_v25  ;;  %v3196_v25 = vunpack.c.l.bf16 %v3910_v49 }
 0x2fc   : > { %3782 = vmatprep.mubr.msk.bf16.mxu0 %vm6595_vm3, %v2962_v2 }
 0x2ff   : > { %v2897_v63 = vpop.f32.mrf.mxu1 }
 0x300   : > { %v2898_v40 = vadd.f32 %v5950_v4, %v2897_v63  ;;  %v3197_v63 = vunpack.c.h.bf16 %v3910_v49 }
 0x301   : > { %v2899_v33 = vpop.f32.mrf.mxu1 }
 0x302   : > { %v2946_v51 = vmax.f32 %v2898_v40, 0.0 }
 0x303   : > { %3783 = vmatmul.mubr.msk.bf16.gmra.mxu0 %vm6596_vm8, %v2963_v8  ;;  %v2900_v21 = vpop.f32.mrf.mxu1 }
 0x304   : > { %3786 = vmatprep.mubr.msk.bf16.mxu0 %vm6597_vm0, %v2964_v57  ;;  %v2901_v17 = vadd.f32 %v5950_v4, %v2900_v21 }
 0x305   : > { %v2902_v24 = vpop.f32.mrf.mxu1 }
 0x306   : > { %v2947_v23 = vmax.f32 %v2901_v17, 0.0 }
 0x308   : > { %v2965_v61 = vpack.c.bf16 %v2947_v23, %v2946_v51  ;;  %v2905_v19 = vpop.f32.mrf.mxu1  ;;  %v3911_v51 = vld [vmem:[%s4098_s23 + $0x28] sm:$0xff]  }
 0x309   : > { %v2906_v14 = vadd.f32 %v5950_v4, %v2905_v19  ;;  %v3202_v23 = vunpack.c.l.bf16 %v3911_v51 }
 0x30a   : > { %v2907_v42 = vpop.f32.mrf.mxu1 }
 0x30b   : > { %3787 = vmatmul.mubr.msk.bf16.gmra.mxu0 %vm6598_vm1, %v2965_v61  ;;  %v2948_v35 = vmax.f32 %v2906_v14, 0.0 }
 0x30c   : > { %v2908_v12 = vpop.f32.mrf.mxu1 }
 0x30d   : > { %v2909_v38 = vadd.f32 %v5950_v4, %v2908_v12 }
 0x30e   : > { %v2910_v9 = vpop.f32.mrf.mxu1 }
 0x30f   : > { %v2949_v31 = vmax.f32 %v2909_v38, 0.0  ;;  %v3912_v38 = vld [vmem:[%s4098_s23 + $0x20] sm:$0xff]  }
 0x310   : > { %v3200_v9 = vunpack.c.l.bf16 %v3912_v38 }
 0x311   : > { %v2966_v59 = vpack.c.bf16 %v2949_v31, %v2948_v35 }
 0x313   : > { %v2913_v11 = vpop.f32.mrf.mxu1  ;;  %3790 = vmatprep.mubr.msk.bf16.mxu0 %vm6599_vm10, %v2966_v59 }
 0x314   : > { %v2914_v29 = vadd.f32 %v5950_v4, %v2913_v11 }
 0x315   : > { %v2915_v55 = vpop.f32.mrf.mxu1 }
 0x316   : > { %v2950_v46 = vmax.f32 %v2914_v29, 0.0  ;;  %v3203_v29 = vunpack.c.h.bf16 %v3911_v51 }
 0x317   : > { %v2916_v58 = vpop.f32.mrf.mxu1 }
 0x318   : > { %v2917_v30 = vadd.f32 %v5950_v4, %v2916_v58 }
 0x319   : > { %v2918_v15 = vpop.f32.mrf.mxu1 }
 0x31a   : > { %v2951_v18 = vmax.f32 %v2917_v30, 0.0 }
 0x31c   : > { %v2967_v41 = vpack.c.bf16 %v2951_v18, %v2950_v46 }
 0x31e   : > { %3791 = vmatmul.mubr.msk.bf16.gmra.mxu0 %vm6600_vm11, %v2967_v41  ;;  %v3201_v41 = vunpack.c.h.bf16 %v3912_v38 }
 0x39b   : > { %v3764_v13 = vpop.f32.mrf.mxu0 }
 0x39c   : > { %v3074_v4 = vadd.f32 %v3764_v13, %v6006_v37 }
 0x39d   : > { %v3065_v50 = vpop.f32.mrf.mxu0 }
 0x39e   : > { %v3226_v39 = vadd.f32 %v3194_v62, %v3074_v4  ;;  %v3066_v43 = vadd.f32 %v6006_v37, %v3065_v50  ;;  %v3913_v4 = vld [vmem:[%s4098_s23 + $0x38] sm:$0xff]  }
 0x39f   : > { %v3765_v53 = vpop.f32.mrf.mxu0  ;;  %v3206_v50 = vunpack.c.l.bf16 %v3913_v4 }
 0x3a0   : > { %v3258_v16 = vmax.f32 %v3226_v39, 0.0  ;;  %v3224_v0 = vadd.f32 %v3192_v34, %v3066_v43  ;;  %v3077_v47 = vadd.f32 %v3765_v53, %v6006_v37 }
 0x3a1   : > { %v3068_v45 = vpop.f32.mrf.mxu0 }
 0x3a2   : > { %v3652_v44 = vpack.c.bf16 %v3258_v16, %v3258_v16  ;;  %v3256_v5 = vmax.f32 %v3224_v0, 0.0  ;;  %v3227_v26 = vadd.f32 %v3195_v10, %v3077_v47  ;;  %v3069_v54 = vadd.f32 %v6006_v37, %v3068_v45  ;;  %v3914_v16 = vld [vmem:[%s4098_s23 + $0x30] sm:$0xff]  }
 0x3a3   : > { %v3768_v48 = vpop.f32.mrf.mxu0  ;;  %v3204_v0 = vunpack.c.l.bf16 %v3914_v16 }
 0x3a4   : > { %3419 = vst.msk [vmem:[%s6019_s15 + $0x8] sm:$0xf] %vm3416_vm9, %v3652_v44  ;;  %v3650_v22 = vpack.c.bf16 %v3256_v5, %v3256_v5  ;;  %v3259_v2 = vmax.f32 %v3227_v26, 0.0  ;;  %v3225_v27 = vadd.f32 %v3193_v6, %v3069_v54  ;;  %v3090_v60 = vadd.f32 %v3768_v48, %v6006_v37 }
 0x3a5   : > { %v3081_v56 = vpop.f32.mrf.mxu0  ;;  %v3207_v5 = vunpack.c.h.bf16 %v3913_v4 }
 0x3a6   : > { %3417 = vst.msk [vmem:[%s6019_s15] sm:$0xf] %vm3416_vm9, %v3650_v22  ;;  %v3653_v1 = vpack.c.bf16 %v3259_v2, %v3259_v2  ;;  %v3257_v52 = vmax.f32 %v3225_v27, 0.0  ;;  %v3230_v7 = vadd.f32 %v3198_v20, %v3090_v60  ;;  %v3082_v8 = vadd.f32 %v6006_v37, %v3081_v56 }
 0x3a7   : > { %v3769_v57 = vpop.f32.mrf.mxu0  ;;  %v3205_v22 = vunpack.c.h.bf16 %v3914_v16 }
 0x3a8   : > { %3420 = vst.msk [vmem:[%s6019_s15 + $0xc] sm:$0xf] %vm3416_vm9, %v3653_v1  ;;  %v3651_v33 = vpack.c.bf16 %v3257_v52, %v3257_v52  ;;  %v3262_v40 = vmax.f32 %v3230_v7, 0.0  ;;  %v3228_v21 = vadd.f32 %v3196_v25, %v3082_v8  ;;  %v3093_v17 = vadd.f32 %v3769_v57, %v6006_v37  ;;  %v3915_v1 = vld [vmem:[%s4098_s23 + $0x48] sm:$0xff]  }
 0x3a9   : > { %v3084_v24 = vpop.f32.mrf.mxu0  ;;  %v3210_v52 = vunpack.c.l.bf16 %v3915_v1 }
 0x3aa   : > { %3418 = vst.msk [vmem:[%s6019_s15 + $0x4] sm:$0xf] %vm3416_vm9, %v3651_v33  ;;  %v3656_v61 = vpack.c.bf16 %v3262_v40, %v3262_v40  ;;  %v3260_v19 = vmax.f32 %v3228_v21, 0.0  ;;  %v3231_v42 = vadd.f32 %v3199_v36, %v3093_v17  ;;  %v3085_v14 = vadd.f32 %v6006_v37, %v3084_v24  ;;  %v3916_v40 = vld [vmem:[%s4098_s23 + $0x40] sm:$0xff]  }
 0x3ab   : > { %v3772_v12 = vpop.f32.mrf.mxu0  ;;  %v3208_v21 = vunpack.c.l.bf16 %v3916_v40 }
 0x3ac   : > { %3423 = vst.msk [vmem:[%s6019_s15 + $0x18] sm:$0xf] %vm3416_vm9, %v3656_v61  ;;  %v3654_v35 = vpack.c.bf16 %v3260_v19, %v3260_v19  ;;  %v3263_v31 = vmax.f32 %v3231_v42, 0.0  ;;  %v3229_v59 = vadd.f32 %v3197_v63, %v3085_v14  ;;  %v3106_v11 = vadd.f32 %v3772_v12, %v6006_v37 }
 0x3ad   : > { %v3097_v55 = vpop.f32.mrf.mxu0  ;;  %v3211_v19 = vunpack.c.h.bf16 %v3915_v1 }
 0x3ae   : > { %3421 = vst.msk [vmem:[%s6019_s15 + $0x10] sm:$0xf] %vm3416_vm9, %v3654_v35  ;;  %v3657_v58 = vpack.c.bf16 %v3263_v31, %v3263_v31  ;;  %v3261_v30 = vmax.f32 %v3229_v59, 0.0  ;;  %v3234_v15 = vadd.f32 %v3202_v23, %v3106_v11  ;;  %v3098_v46 = vadd.f32 %v6006_v37, %v3097_v55 }
 0x3af   : > { %v3773_v18 = vpop.f32.mrf.mxu0  ;;  %v3209_v35 = vunpack.c.h.bf16 %v3916_v40 }
 0x3b0   : > { %3424 = vst.msk [vmem:[%s6019_s15 + $0x1c] sm:$0xf] %vm3416_vm9, %v3657_v58  ;;  %v3655_v28 = vpack.c.bf16 %v3261_v30, %v3261_v30  ;;  %v3266_v62 = vmax.f32 %v3234_v15, 0.0  ;;  %v3232_v13 = vadd.f32 %v3200_v9, %v3098_v46  ;;  %v3109_v3 = vadd.f32 %v3773_v18, %v6006_v37  ;;  %v3917_v58 = vld [vmem:[%s4098_s23 + $0x58] sm:$0xff]  }
 0x3b1   : > { %v3100_v34 = vpop.f32.mrf.mxu0  ;;  %v3214_v30 = vunpack.c.l.bf16 %v3917_v58 }
 0x3b2   : > { %3422 = vst.msk [vmem:[%s6019_s15 + $0x14] sm:$0xf] %vm3416_vm9, %v3655_v28  ;;  %v3660_v39 = vpack.c.bf16 %v3266_v62, %v3266_v62  ;;  %v3264_v43 = vmax.f32 %v3232_v13, 0.0  ;;  %v3235_v10 = vadd.f32 %v3203_v29, %v3109_v3  ;;  %v3101_v53 = vadd.f32 %v6006_v37, %v3100_v34  ;;  %v3918_v62 = vld [vmem:[%s4098_s23 + $0x50] sm:$0xff]  }
 0x3b3   : > { %v3776_v6 = vpop.f32.mrf.mxu0  ;;  %v3212_v13 = vunpack.c.l.bf16 %v3918_v62 }
 0x3b4   : > { %3427 = vst.msk [vmem:[%s6019_s15 + $0x28] sm:$0xf] %vm3416_vm9, %v3660_v39  ;;  %v3658_v47 = vpack.c.bf16 %v3264_v43, %v3264_v43  ;;  %v3267_v45 = vmax.f32 %v3235_v10, 0.0  ;;  %v3233_v32 = vadd.f32 %v3201_v41, %v3101_v53  ;;  %v3122_v20 = vadd.f32 %v3776_v6, %v6006_v37 }
 0x3b5   : > { %v3113_v44 = vpop.f32.mrf.mxu0  ;;  %v3215_v43 = vunpack.c.h.bf16 %v3917_v58 }
 0x3b6   : > { %3425 = vst.msk [vmem:[%s6019_s15 + $0x20] sm:$0xf] %vm3416_vm9, %v3658_v47  ;;  %v3661_v26 = vpack.c.bf16 %v3267_v45, %v3267_v45  ;;  %v3265_v54 = vmax.f32 %v3233_v32, 0.0  ;;  %v3238_v48 = vadd.f32 %v3206_v50, %v3122_v20  ;;  %v3114_v49 = vadd.f32 %v6006_v37, %v3113_v44 }
 0x3b7   : > { %v3777_v25 = vpop.f32.mrf.mxu0  ;;  %v3213_v47 = vunpack.c.h.bf16 %v3918_v62 }
 0x3b8   : > { %3428 = vst.msk [vmem:[%s6019_s15 + $0x2c] sm:$0xf] %vm3416_vm9, %v3661_v26  ;;  %v3659_v2 = vpack.c.bf16 %v3265_v54, %v3265_v54  ;;  %v3270_v27 = vmax.f32 %v3238_v48, 0.0  ;;  %v3236_v60 = vadd.f32 %v3204_v0, %v3114_v49  ;;  %v3125_v56 = vadd.f32 %v3777_v25, %v6006_v37 }
 0x3b9   : > { %v3116_v36 = vpop.f32.mrf.mxu0 }
 0x3ba   : > { %3426 = vst.msk [vmem:[%s6019_s15 + $0x24] sm:$0xf] %vm3416_vm9, %v3659_v2  ;;  %v3664_v7 = vpack.c.bf16 %v3270_v27, %v3270_v27  ;;  %v3268_v8 = vmax.f32 %v3236_v60, 0.0  ;;  %v3239_v57 = vadd.f32 %v3207_v5, %v3125_v56  ;;  %v3117_v63 = vadd.f32 %v6006_v37, %v3116_v36  ;;  %v3919_v56 = vld [vmem:[%s4098_s23 + $0x68] sm:$0xff]  }
 0x3bb   : > { %v3780_v33 = vpop.f32.mrf.mxu0  ;;  %v3218_v36 = vunpack.c.l.bf16 %v3919_v56 }
 0x3bc   : > { %3431 = vst.msk [vmem:[%s6019_s15 + $0x38] sm:$0xf] %vm3416_vm9, %v3664_v7  ;;  %v3662_v17 = vpack.c.bf16 %v3268_v8, %v3268_v8  ;;  %v3271_v24 = vmax.f32 %v3239_v57, 0.0  ;;  %v3237_v51 = vadd.f32 %v3205_v22, %v3117_v63  ;;  %v3138_v23 = vadd.f32 %v3780_v33, %v6006_v37  ;;  %v3920_v8 = vld [vmem:[%s4098_s23 + $0x60] sm:$0xff]  }
 0x3bd   : > { %v3129_v61 = vpop.f32.mrf.mxu0  ;;  %v3216_v57 = vunpack.c.l.bf16 %v3920_v8 }
 0x3be   : > { %3429 = vst.msk [vmem:[%s6019_s15 + $0x30] sm:$0xf] %vm3416_vm9, %v3662_v17  ;;  %v3665_v42 = vpack.c.bf16 %v3271_v24, %v3271_v24  ;;  %v3269_v14 = vmax.f32 %v3237_v51, 0.0  ;;  %v3242_v12 = vadd.f32 %v3210_v52, %v3138_v23  ;;  %v3130_v38 = vadd.f32 %v6006_v37, %v3129_v61 }
 0x3bf   : > { %v3781_v9 = vpop.f32.mrf.mxu0  ;;  %v3217_v61 = vunpack.c.h.bf16 %v3920_v8 }
 0x3c0   : > { %3432 = vst.msk [vmem:[%s6019_s15 + $0x3c] sm:$0xf] %vm3416_vm9, %v3665_v42  ;;  %v3663_v31 = vpack.c.bf16 %v3269_v14, %v3269_v14  ;;  %v3274_v59 = vmax.f32 %v3242_v12, 0.0  ;;  %v3240_v11 = vadd.f32 %v3208_v21, %v3130_v38  ;;  %v3141_v55 = vadd.f32 %v3781_v9, %v6006_v37 }
 0x3c1   : > { %v3132_v29 = vpop.f32.mrf.mxu0  ;;  %v3219_v21 = vunpack.c.h.bf16 %v3919_v56 }
 0x3c2   : > { %3430 = vst.msk [vmem:[%s6019_s15 + $0x34] sm:$0xf] %vm3416_vm9, %v3663_v31  ;;  %v3668_v15 = vpack.c.bf16 %v3274_v59, %v3274_v59  ;;  %v3272_v46 = vmax.f32 %v3240_v11, 0.0  ;;  %v3243_v18 = vadd.f32 %v3211_v19, %v3141_v55  ;;  %v3133_v41 = vadd.f32 %v6006_v37, %v3132_v29  ;;  %v3921_v29 = vld [vmem:[%s4098_s23 + $0x78] sm:$0xff]  }
 0x3c3   : > { %v3784_v28 = vpop.f32.mrf.mxu0  ;;  %v3222_v58 = vunpack.c.l.bf16 %v3921_v29 }
 0x3c4   : > { %3435 = vst.msk [vmem:[%s6019_s15 + $0x48] sm:$0xf] %vm3416_vm9, %v3668_v15  ;;  %v3666_v3 = vpack.c.bf16 %v3272_v46, %v3272_v46  ;;  %v3275_v34 = vmax.f32 %v3243_v18, 0.0  ;;  %v3241_v4 = vadd.f32 %v3209_v35, %v3133_v41  ;;  %v3154_v50 = vadd.f32 %v3784_v28, %v6006_v37  ;;  %v3922_v46 = vld [vmem:[%s4098_s23 + $0x70] sm:$0xff]   ;;  %s3682_s23 = sshll.u32 %s4057_s28, 11  ;;  %s6136_s28 = scalar_lea.sflag [#allocation3], %s269_s29 }
 0x3c5   : > { %v3145_v39 = vpop.f32.mrf.mxu0  ;;  %v3220_v18 = vunpack.c.l.bf16 %v3922_v46  ;;  %s6126_s9 = scalar_lea.hbm %s6185_s7, %s3682_s23 }
 0x3c6   : > { %3433 = vst.msk [vmem:[%s6019_s15 + $0x40] sm:$0xf] %vm3416_vm9, %v3666_v3  ;;  %v3669_v10 = vpack.c.bf16 %v3275_v34, %v3275_v34  ;;  %v3273_v53 = vmax.f32 %v3241_v4, 0.0  ;;  %v3246_v6 = vadd.f32 %v3214_v30, %v3154_v50  ;;  %v3146_v16 = vadd.f32 %v6006_v37, %v3145_v39 }
 0x3c7   : > { %v3785_v0 = vpop.f32.mrf.mxu0  ;;  %v3221_v39 = vunpack.c.h.bf16 %v3922_v46 }
 0x3c8   : > { %3436 = vst.msk [vmem:[%s6019_s15 + $0x4c] sm:$0xf] %vm3416_vm9, %v3669_v10  ;;  %v3667_v45 = vpack.c.bf16 %v3273_v53, %v3273_v53  ;;  %v3278_v32 = vmax.f32 %v3246_v6, 0.0  ;;  %v3244_v20 = vadd.f32 %v3212_v13, %v3146_v16  ;;  %v3157_v44 = vadd.f32 %v3785_v0, %v6006_v37 }
 0x3c9   : > { %v3148_v5 = vpop.f32.mrf.mxu0  ;;  %v3223_v13 = vunpack.c.h.bf16 %v3921_v29 }
 0x3ca   : > { %3434 = vst.msk [vmem:[%s6019_s15 + $0x44] sm:$0xf] %vm3416_vm9, %v3667_v45  ;;  %v3672_v26 = vpack.c.bf16 %v3278_v32, %v3278_v32  ;;  %v3276_v54 = vmax.f32 %v3244_v20, 0.0  ;;  %v3247_v48 = vadd.f32 %v3215_v43, %v3157_v44  ;;  %v3149_v49 = vadd.f32 %v6006_v37, %v3148_v5 }
 0x3cb   : > { %v3788_v1 = vpop.f32.mrf.mxu0 }
 0x3cc   : > { %3439 = vst.msk [vmem:[%s6019_s15 + $0x58] sm:$0xf] %vm3416_vm9, %v3672_v26  ;;  %v3670_v25 = vpack.c.bf16 %v3276_v54, %v3276_v54  ;;  %v3279_v22 = vmax.f32 %v3247_v48, 0.0  ;;  %v3245_v2 = vadd.f32 %v3213_v47, %v3149_v49  ;;  %v3170_v7 = vadd.f32 %v3788_v1, %v6006_v37 }
 0x3cd   : > { %v3161_v63 = vpop.f32.mrf.mxu0 }
 0x3ce   : > { %3437 = vst.msk [vmem:[%s6019_s15 + $0x50] sm:$0xf] %vm3416_vm9, %v3670_v25  ;;  %v3673_v27 = vpack.c.bf16 %v3279_v22, %v3279_v22  ;;  %v3277_v60 = vmax.f32 %v3245_v2, 0.0  ;;  %v3250_v33 = vadd.f32 %v3218_v36, %v3170_v7  ;;  %v3162_v40 = vadd.f32 %v6006_v37, %v3161_v63 }
 0x3cf   : > { %v3789_v17 = vpop.f32.mrf.mxu0 }
 0x3d0   : > { %3440 = vst.msk [vmem:[%s6019_s15 + $0x5c] sm:$0xf] %vm3416_vm9, %v3673_v27  ;;  %v3671_v52 = vpack.c.bf16 %v3277_v60, %v3277_v60  ;;  %v3282_v24 = vmax.f32 %v3250_v33, 0.0  ;;  %v3248_v51 = vadd.f32 %v3216_v57, %v3162_v40  ;;  %v3173_v23 = vadd.f32 %v3789_v17, %v6006_v37 }
 0x3d1   : > { %v3164_v19 = vpop.f32.mrf.mxu0 }
 0x3d2   : > { %3438 = vst.msk [vmem:[%s6019_s15 + $0x54] sm:$0xf] %vm3416_vm9, %v3671_v52  ;;  %v3676_v42 = vpack.c.bf16 %v3282_v24, %v3282_v24  ;;  %v3280_v14 = vmax.f32 %v3248_v51, 0.0  ;;  %v3251_v12 = vadd.f32 %v3219_v21, %v3173_v23  ;;  %v3165_v38 = vadd.f32 %v6006_v37, %v3164_v19 }
 0x3d4   : > { %3443 = vst.msk [vmem:[%s6019_s15 + $0x68] sm:$0xf] %vm3416_vm9, %v3676_v42  ;;  %v3674_v9 = vpack.c.bf16 %v3280_v14, %v3280_v14  ;;  %v3283_v35 = vmax.f32 %v3251_v12, 0.0  ;;  %v3249_v31 = vadd.f32 %v3217_v61, %v3165_v38 }
 0x3d6   : > { %3441 = vst.msk [vmem:[%s6019_s15 + $0x60] sm:$0xf] %vm3416_vm9, %v3674_v9  ;;  %v3677_v59 = vpack.c.bf16 %v3283_v35, %v3283_v35  ;;  %v3281_v11 = vmax.f32 %v3249_v31, 0.0 }
 0x3d8   : > { %3444 = vst.msk [vmem:[%s6019_s15 + $0x6c] sm:$0xf] %vm3416_vm9, %v3677_v59  ;;  %v3675_v55 = vpack.c.bf16 %v3281_v11, %v3281_v11 }
 0x3da   : > { %3442 = vst.msk [vmem:[%s6019_s15 + $0x64] sm:$0xf] %vm3416_vm9, %v3675_v55 }
 0x3de   : > { %v3792_v30 = vpop.f32.mrf.mxu0 }
 0x3df   : > { %v3186_v15 = vadd.f32 %v3792_v30, %v6006_v37 }
 0x3e0   : > { %v3177_v41 = vpop.f32.mrf.mxu0 }
 0x3e1   : > { %v3254_v28 = vadd.f32 %v3222_v58, %v3186_v15  ;;  %v3178_v62 = vadd.f32 %v6006_v37, %v3177_v41 }
 0x3e2   : > { %v3793_v3 = vpop.f32.mrf.mxu0 }
 0x3e3   : > { %v3286_v34 = vmax.f32 %v3254_v28, 0.0  ;;  %v3252_v4 = vadd.f32 %v3220_v18, %v3178_v62  ;;  %v3189_v50 = vadd.f32 %v3793_v3, %v6006_v37 }
 0x3e4   : > { %v3180_v43 = vpop.f32.mrf.mxu0 }
 0x3e5   : > { %v3680_v10 = vpack.c.bf16 %v3286_v34, %v3286_v34  ;;  %v3284_v53 = vmax.f32 %v3252_v4, 0.0  ;;  %v3255_v6 = vadd.f32 %v3223_v13, %v3189_v50  ;;  %v3181_v16 = vadd.f32 %v6006_v37, %v3180_v43 }
 0x3e7   : > { %3447 = vst.msk [vmem:[%s6019_s15 + $0x78] sm:$0xf] %vm3416_vm9, %v3680_v10  ;;  %v3678_v0 = vpack.c.bf16 %v3284_v53, %v3284_v53  ;;  %v3287_v47 = vmax.f32 %v3255_v6, 0.0  ;;  %v3253_v45 = vadd.f32 %v3221_v39, %v3181_v16 }
 0x3e9   : > { %3445 = vst.msk [vmem:[%s6019_s15 + $0x70] sm:$0xf] %vm3416_vm9, %v3678_v0  ;;  %v3681_v32 = vpack.c.bf16 %v3287_v47, %v3287_v47  ;;  %v3285_v20 = vmax.f32 %v3253_v45, 0.0 }
 0x3eb   : > { %3448 = vst.msk [vmem:[%s6019_s15 + $0x7c] sm:$0xf] %vm3416_vm9, %v3681_v32  ;;  %v3679_v37 = vpack.c.bf16 %v3285_v20, %v3285_v20 }
 0x3ed   : > { %3446 = vst.msk [vmem:[%s6019_s15 + $0x74] sm:$0xf] %vm3416_vm9, %v3679_v37 }
 0x3ee   : > { %3936 = shalt.err (!%p3933_p3)
}
 0x3ef   : > { %s3937_s22 = scalar_lea.hbm %s6126_s9, 2048  ;;  %s3941_s15 = scalar_lea.hbm %s6185_s7, 4096 }
 0x3f0   : > { %p3938_p4 = scmp.ne.s32.totalorder %s6126_s9, %s3937_s22  ;;  %p3942_p9 = scmp.lt.s32.totalorder %s6126_s9, %s6185_s7 }
 0x3f1   : > { %p3943_p10 = scmp.lt.s32.totalorder %s3941_s15, %s3937_s22 }
 0x3f2   : > { %p3939_p7 = pnand %p3938_p4, %p4074_p5 }
 0x3f3   : > { %p3944_p11 = por %p3943_p10, %p3942_p9 }
 0x3f4   : > { %p3940_p8 = pneg %p3939_p7 }
 0x3f6   : > { %p3945_p12 = pnand %p3944_p11, %p3940_p8 }
 0x3f8   : > { %3948 = shalt.err (!%p3945_p12)
}
 0x3f9   : > { %s3995_s19 = smov 4  }
 0x3fa   : > { %3812 = dma.vmem_to_hbm [thread:$0]  (%p4074_p5), %s6130_s16, 2048, %s6126_s9, %s6136_s28, %s3989_s20, %s3989_s20, %s3995_s19  }
 0x3fb PF: > { %p3818_p13 = scmp.ge.s32.totalorder %s3983_s27, 2  ;;  %s3478_s13 = sand.u32 1, %s3971_s24  }
 0x3fc   : > { %s3479_s14 = scalar_lea.sflag [#allocation3], %s3478_s13 }
 0x3fd   : > { %p3815_p0 = pnand %p3818_p13, %p4078_p6 }
 0x3ff   : > { %p3816_p1 = pneg %p3815_p0 }
 0x401   : > { %3966 = dma.done.wait (%p3816_p1), %s3479_s14, 2048  }
 0x402   : > { %3968 = vsyncadd (%p3816_p1), %s3479_s14, 4294965248  ;;  %p17_p2 = scmp.ge.s32.totalorder %s4061_s30, 4   ;;  %s6601_s24 = smov %s3975_s25 }
 0x403   : > { %s6602_s25 = smov %s3979_s26  ;;  %s6603_s26 = smov %s4072_s10 }
 0x404   : > { %s6604_s27 = smov %s4061_s30  ;;  %19 = sbr.rel (!%p17_p2) target bundleno = 3 (0x3), region = 83 }
 0x409   :  { %3484 = vsyncpa [#allocation3], 1 }
 0x40a   :  { %3486 = vsyncpa [#allocation3 + $0x1], 1 }

</bundles_post_ra>
